<compile_context>
chip_gen: v7x
topology: tpu7x:2x2x1
jax: 0.10.0
libtpu: 0.0.40
codegen_flags: <defaults>
</compile_context>

<pallas_src>
import jax
import jax.numpy as jnp
from jax.experimental import pallas as pl
from jax.experimental.pallas import tpu as pltpu

CHUNK = 8  # timesteps per fori_loop iteration (static inner unroll)


# ----------------------------- Pallas kernel ------------------------------ #
def lstm_stack_kernel(x_ref,                 # (NC, B, CHUNK)  x[q,b,r] = x[b, q*CHUNK+r]
                      wih0_ref,              # (1, 4H)  layer-0 input weights
                      wih1x_ref,             # (1, 4H)  layer-1 skip (x) weights
                      wlx_ref,               # (1, O)   head skip (x) weights
                      w0_ref,                # (H, 8H)  [wih1_h | whh0]
                      w1_ref,                # (H, 4H+O)[whh1   | wl_h]
                      b0_ref, b1_ref, bl_ref,  # (1,4H) (1,4H) (1,O)  b_ih+b_hh folded
                      y_ref):                # (NC, B, CHUNK)
    NC, B, CH = x_ref.shape
    H4 = wih0_ref.shape[1]
    H = H4 // 4
    O = wlx_ref.shape[1]

    # --- hoisted loads & broadcasts (traced once, reused across the loop) ---
    wih0 = jnp.broadcast_to(wih0_ref[...], (B, H4))
    wih1x = jnp.broadcast_to(wih1x_ref[...], (B, H4))
    wlx = jnp.broadcast_to(wlx_ref[...], (B, O))
    w0 = w0_ref[...]
    w1 = w1_ref[...]
    b0 = jnp.broadcast_to(b0_ref[...], (B, H4))
    b1 = jnp.broadcast_to(b1_ref[...], (B, H4))
    bl = jnp.broadcast_to(bl_ref[...], (B, O))

    # one-hot lane selectors for assembling a chunk of outputs (CH, CH)
    row = jax.lax.broadcasted_iota(jnp.int32, (CH, CH), 0)
    col = jax.lax.broadcasted_iota(jnp.int32, (CH, CH), 1)
    eye = (row == col).astype(jnp.float32)

    def dot32(a, b):
        return jnp.dot(a, b, preferred_element_type=jnp.float32,
                       precision=jax.lax.Precision.HIGHEST)

    def gates(z, c_prev):
        # gate column order: i | f | o | g  -> one wide sigmoid over [:, :3H]
        s = jax.nn.sigmoid(z[:, :3 * H])
        i_g = s[:, 0 * H:1 * H]
        f_g = s[:, 1 * H:2 * H]
        o_g = s[:, 2 * H:3 * H]
        g_g = jnp.tanh(z[:, 3 * H:4 * H])
        c_new = f_g * c_prev + i_g * g_g
        h_new = o_g * jnp.tanh(c_new)
        return h_new, c_new

    def chunk_body(q, carry):
        c0, c1, r0, r1 = carry               # r0 = h0_prev@whh0, r1 = h1_prev@whh1
        xc = x_ref[q]                        # (B, CH), batch on sublanes
        yc = jnp.zeros((B, CH), jnp.float32)
        for r in range(CH):                  # static unroll of CH timesteps
            x_col = xc[:, r:r + 1]           # (B, 1) static lane slice

            # Layer 0: fused i|f|o|g gates; recurrent part comes pre-computed.
            z0 = x_col * wih0 + r0 + b0
            h0, c0 = gates(z0, c0)

            # Single matmul: layer-1 input part AND next-step layer-0 recurrence.
            d0 = dot32(h0, w0)               # (B, 8H)
            z1 = d0[:, :H4] + x_col * wih1x + r1 + b1
            r0 = d0[:, H4:]
            h1, c1 = gates(z1, c1)

            # Single matmul: next-step layer-1 recurrence AND linear head.
            d1 = dot32(h1, w1)               # (B, 4H+O)
            y_col = d1[:, H4:] + x_col * wlx + bl   # (B, O), O == 1
            r1 = d1[:, :H4]

            yc = yc + y_col * eye[r:r + 1, :]       # place in lane r
        y_ref[q] = yc                        # one VMEM store per chunk
        return (c0, c1, r0, r1)

    c_init = jnp.zeros((B, H), jnp.float32)
    r_init = jnp.zeros((B, H4), jnp.float32)
    jax.lax.fori_loop(0, NC, chunk_body, (c_init, c_init, r_init, r_init))


# ------------------------------ Wrapper ----------------------------------- #
@jax.jit
def model_forward(x_btf, params):
    """x_btf: (B, T, input_sz=1) float32 -> (B, T, output_sz=1) float32."""
    B, T, F = x_btf.shape
    H = params["whh0"].shape[0]
    O = params["wl_h"].shape[-1]
    assert F == 1 and O == 1, "kernel specialized to input_sz == output_sz == 1"

    B_pad = max(8, ((B + 7) // 8) * 8)       # round batch up to the sublane tile
    NC = (T + CHUNK - 1) // CHUNK
    T_pad = NC * CHUNK

    # (B, T) -> padded (B_pad, T_pad) -> chunked (NC, B_pad, CHUNK)
    x_bt = x_btf.astype(jnp.float32)[..., 0]
    x_pad = jnp.zeros((B_pad, T_pad), jnp.float32).at[:B, :T].set(x_bt)
    x_chunks = jnp.transpose(x_pad.reshape(B_pad, NC, CHUNK), (1, 0, 2))

    # Fused recurrent weights (built once per call, in XLA).
    w0 = jnp.concatenate([params["wih1_h"], params["whh0"]], axis=1)  # (H, 8H)
    w1 = jnp.concatenate([params["whh1"], params["wl_h"]], axis=1)    # (H, 4H+O)

    weight_args = (params["wih0"], params["wih1_x"], params["wl_x"],
                   w0, w1, params["b0"], params["b1"], params["bl"])
    n_inputs = 1 + len(weight_args)

    # x + y padded VMEM tiles (+ headroom); keeps long T viable on v7x too.
    vmem_needed = 2 * NC * B_pad * 128 * 4 + (4 << 20)
    vmem_limit = int(min(64 << 20, max(16 << 20, vmem_needed)))

    y_chunks = pl.pallas_call(
        lstm_stack_kernel,
        out_shape=jax.ShapeDtypeStruct((NC, B_pad, CHUNK), jnp.float32),
        in_specs=[pl.BlockSpec(memory_space=pltpu.MemorySpace.VMEM)] * n_inputs,
        out_specs=pl.BlockSpec(memory_space=pltpu.MemorySpace.VMEM),
        compiler_params=pltpu.CompilerParams(vmem_limit_bytes=vmem_limit),
    )(x_chunks, *weight_args)

    # (NC, B_pad, CHUNK) -> (B, T, 1)
    y_bt = jnp.transpose(y_chunks, (1, 0, 2)).reshape(B_pad, T_pad)
    return y_bt[:B, :T][..., None]


# ------------------------ Deterministic parameters ------------------------ #
def init_params(key, hidden_sz=10, input_sz=1, output_sz=1):
    """Mimics torch LSTMCell / Linear uniform(-1/sqrt(fan), 1/sqrt(fan)) init.
    Weights are stored as (in_dim, 4H) with gate columns ordered i|f|o|g
    (to load torch weights, transpose and permute gate blocks from i,f,g,o)."""
    H, F, O = hidden_sz, input_sz, output_sz
    ks = jax.random.split(key, 12)
    k_lstm = 1.0 / (H ** 0.5)
    k_lin = 1.0 / ((H + F) ** 0.5)

    def u(k, shape, bound):
        return jax.random.uniform(k, shape, minval=-bound, maxval=bound,
                                  dtype=jnp.float32)

    return {
        # Layer 0 (input size F).
        "wih0": u(ks[0], (F, 4 * H), k_lstm),
        "whh0": u(ks[1], (H, 4 * H), k_lstm),
        "b0":   u(ks[2], (1, 4 * H), k_lstm) + u(ks[3], (1, 4 * H), k_lstm),
        # Layer 1 (input [h0, x] split into H-part and F-part).
        "wih1_h": u(ks[4], (H, 4 * H), k_lstm),
        "wih1_x": u(ks[5], (F, 4 * H), k_lstm),
        "whh1":   u(ks[6], (H, 4 * H), k_lstm),
        "b1":     u(ks[7], (1, 4 * H), k_lstm) + u(ks[8], (1, 4 * H), k_lstm),
        # Linear head on [h1, x].
        "wl_h": u(ks[9], (H, O), k_lin),
        "wl_x": u(ks[10], (F, O), k_lin),
        "bl":   u(ks[11], (1, O), k_lin),
    }


# --------------------------- Pure-JAX reference ---------------------------- #
def ref_forward(x_btf, params):
    """Matches PyTorch semantics exactly: explicit [h, x] concatenation and a
    single joined weight matrix per cell / head (gate order i|f|o|g)."""
    B, T, F = x_btf.shape
    H = params["whh0"].shape[0]
    HIGH = jax.lax.Precision.HIGHEST

    wih1 = jnp.concatenate([params["wih1_h"], params["wih1_x"]], axis=0)
    wl = jnp.concatenate([params["wl_h"], params["wl_x"]], axis=0)

    def cell(inp, h, c, wih, whh, b):
        z = (jnp.dot(inp, wih, precision=HIGH)
             + jnp.dot(h, whh, precision=HIGH) + b)
        i = jax.nn.sigmoid(z[:, 0 * H:1 * H])
        f = jax.nn.sigmoid(z[:, 1 * H:2 * H])
        o = jax.nn.sigmoid(z[:, 2 * H:3 * H])
        g = jnp.tanh(z[:, 3 * H:4 * H])
        c = f * c + i * g
        h = o * jnp.tanh(c)
        return h, c

    def step(carry, x_t):
        h0, c0, h1, c1 = carry
        h0, c0 = cell(x_t, h0, c0, params["wih0"], params["whh0"], params["b0"])
        inp1 = jnp.concatenate([h0, x_t], axis=-1)
        h1, c1 = cell(inp1, h1, c1, wih1, params["whh1"], params["b1"])
        inp2 = jnp.concatenate([h1, x_t], axis=-1)
        y = jnp.dot(inp2, wl, precision=HIGH) + params["bl"]
        return (h0, c0, h1, c1), y

    init = tuple(jnp.zeros((B, H), jnp.float32) for _ in range(4))
    _, ys = jax.lax.scan(step, init, jnp.transpose(x_btf, (1, 0, 2)))
    return jnp.transpose(ys, (1, 0, 2))


if __name__ == "__main__":
    B, T = 4, 8
    HIDDEN, IN, OUT = 10, 1, 1

    key = jax.random.PRNGKey(0)
    kx, kp = jax.random.split(key)
    params = init_params(kp, hidden_sz=HIDDEN, input_sz=IN, output_sz=OUT)
    x = jax.random.normal(kx, (B, T, IN), dtype=jnp.float32)

    y = model_forward(x, params)
    jax.block_until_ready(y)

    y_ref = ref_forward(x, params)
    assert y.shape == (B, T, OUT), y.shape
    assert jnp.allclose(y, y_ref, atol=1e-5, rtol=1e-5), \
        float(jnp.max(jnp.abs(y - y_ref)))
    print("KERNEL_OK")
</pallas_src>

<mosaic_0001>
module attributes {stable_mosaic.version = 11 : i64} {
  func.func @lstm_stack_kernel(%arg0: memref<1x8x8xf32, #tpu.memory_space<vmem>>, %arg1: memref<1x40xf32, #tpu.memory_space<vmem>>, %arg2: memref<1x40xf32, #tpu.memory_space<vmem>>, %arg3: memref<1x1xf32, #tpu.memory_space<vmem>>, %arg4: memref<10x80xf32, #tpu.memory_space<vmem>>, %arg5: memref<10x41xf32, #tpu.memory_space<vmem>>, %arg6: memref<1x40xf32, #tpu.memory_space<vmem>>, %arg7: memref<1x40xf32, #tpu.memory_space<vmem>>, %arg8: memref<1x1xf32, #tpu.memory_space<vmem>>, %arg9: memref<1x8x8xf32, #tpu.memory_space<vmem>>) attributes {dimension_semantics = [], scalar_prefetch = 0 : i64, scratch_operands = 0 : i64, tpu.core_type = #tpu.core_type<tc>} {
    %c0 = arith.constant 0 : index
    %c0_0 = arith.constant 0 : index
    %0 = vector.load %arg1[%c0, %c0_0] : memref<1x40xf32, #tpu.memory_space<vmem>>, vector<1x40xf32>
    %1 = vector.shape_cast %0 : vector<1x40xf32> to vector<1x40xf32>
    %2 = vector.broadcast %1 : vector<1x40xf32> to vector<8x40xf32>
    %c0_1 = arith.constant 0 : index
    %c0_2 = arith.constant 0 : index
    %3 = vector.load %arg2[%c0_1, %c0_2] : memref<1x40xf32, #tpu.memory_space<vmem>>, vector<1x40xf32>
    %4 = vector.shape_cast %3 : vector<1x40xf32> to vector<1x40xf32>
    %5 = vector.broadcast %4 : vector<1x40xf32> to vector<8x40xf32>
    %c0_3 = arith.constant 0 : index
    %c0_4 = arith.constant 0 : index
    %6 = vector.load %arg3[%c0_3, %c0_4] : memref<1x1xf32, #tpu.memory_space<vmem>>, vector<1x1xf32>
    %7 = vector.shape_cast %6 : vector<1x1xf32> to vector<1x1xf32>
    %8 = vector.broadcast %7 : vector<1x1xf32> to vector<8x1xf32>
    %c0_5 = arith.constant 0 : index
    %c0_6 = arith.constant 0 : index
    %9 = vector.load %arg4[%c0_5, %c0_6] : memref<10x80xf32, #tpu.memory_space<vmem>>, vector<10x80xf32>
    %c0_7 = arith.constant 0 : index
    %c0_8 = arith.constant 0 : index
    %10 = vector.load %arg5[%c0_7, %c0_8] : memref<10x41xf32, #tpu.memory_space<vmem>>, vector<10x41xf32>
    %c0_9 = arith.constant 0 : index
    %c0_10 = arith.constant 0 : index
    %11 = vector.load %arg6[%c0_9, %c0_10] : memref<1x40xf32, #tpu.memory_space<vmem>>, vector<1x40xf32>
    %12 = vector.shape_cast %11 : vector<1x40xf32> to vector<1x40xf32>
    %13 = vector.broadcast %12 : vector<1x40xf32> to vector<8x40xf32>
    %c0_11 = arith.constant 0 : index
    %c0_12 = arith.constant 0 : index
    %14 = vector.load %arg7[%c0_11, %c0_12] : memref<1x40xf32, #tpu.memory_space<vmem>>, vector<1x40xf32>
    %15 = vector.shape_cast %14 : vector<1x40xf32> to vector<1x40xf32>
    %16 = vector.broadcast %15 : vector<1x40xf32> to vector<8x40xf32>
    %c0_13 = arith.constant 0 : index
    %c0_14 = arith.constant 0 : index
    %17 = vector.load %arg8[%c0_13, %c0_14] : memref<1x1xf32, #tpu.memory_space<vmem>>, vector<1x1xf32>
    %18 = vector.shape_cast %17 : vector<1x1xf32> to vector<1x1xf32>
    %19 = vector.broadcast %18 : vector<1x1xf32> to vector<8x1xf32>
    %20 = tpu.iota {dimensions = array<i32: 0>} : vector<8x8xi32>
    %21 = tpu.iota {dimensions = array<i32: 1>} : vector<8x8xi32>
    %22 = arith.cmpi eq, %20, %21 : vector<8x8xi32>
    %23 = arith.extui %22 : vector<8x8xi1> to vector<8x8xi32>
    %24 = arith.sitofp %23 : vector<8x8xi32> to vector<8x8xf32>
    %cst = arith.constant 0.000000e+00 : f32
    %25 = vector.broadcast %cst : f32 to vector<8x10xf32>
    %cst_15 = arith.constant 0.000000e+00 : f32
    %26 = vector.broadcast %cst_15 : f32 to vector<8x40xf32>
    %c0_i32 = arith.constant 0 : i32
    %27 = arith.index_cast %c0_i32 : i32 to index
    %c0_16 = arith.constant 0 : index
    %c0_17 = arith.constant 0 : index
    %28 = vector.load %arg0[%27, %c0_16, %c0_17] : memref<1x8x8xf32, #tpu.memory_space<vmem>>, vector<1x8x8xf32>
    %29 = vector.shape_cast %28 : vector<1x8x8xf32> to vector<8x8xf32>
    %cst_18 = arith.constant 0.000000e+00 : f32
    %30 = vector.broadcast %cst_18 : f32 to vector<8x8xf32>
    %31 = vector.extract_strided_slice %29 {offsets = [0, 0], sizes = [8, 1], strides = [1, 1]} : vector<8x8xf32> to vector<8x1xf32>
    %32 = vector.broadcast %31 : vector<8x1xf32> to vector<8x40xf32>
    %33 = arith.mulf %32, %2 : vector<8x40xf32>
    %34 = arith.addf %33, %26 : vector<8x40xf32>
    %35 = arith.addf %34, %13 : vector<8x40xf32>
    %36 = vector.extract_strided_slice %35 {offsets = [0, 0], sizes = [8, 30], strides = [1, 1]} : vector<8x40xf32> to vector<8x30xf32>
    %37 = arith.negf %36 : vector<8x30xf32>
    %38 = math.exp %37 : vector<8x30xf32>
    %cst_19 = arith.constant 1.000000e+00 : f32
    %39 = vector.broadcast %cst_19 : f32 to vector<8x30xf32>
    %40 = arith.addf %39, %38 : vector<8x30xf32>
    %41 = arith.divf %39, %40 : vector<8x30xf32>
    %42 = vector.extract_strided_slice %41 {offsets = [0, 0], sizes = [8, 10], strides = [1, 1]} : vector<8x30xf32> to vector<8x10xf32>
    %43 = vector.extract_strided_slice %41 {offsets = [0, 10], sizes = [8, 10], strides = [1, 1]} : vector<8x30xf32> to vector<8x10xf32>
    %44 = vector.extract_strided_slice %41 {offsets = [0, 20], sizes = [8, 10], strides = [1, 1]} : vector<8x30xf32> to vector<8x10xf32>
    %45 = vector.extract_strided_slice %35 {offsets = [0, 30], sizes = [8, 10], strides = [1, 1]} : vector<8x40xf32> to vector<8x10xf32>
    %46 = math.tanh %45 : vector<8x10xf32>
    %47 = arith.mulf %43, %25 : vector<8x10xf32>
    %48 = arith.mulf %42, %46 : vector<8x10xf32>
    %49 = arith.addf %47, %48 : vector<8x10xf32>
    %50 = math.tanh %49 : vector<8x10xf32>
    %51 = arith.mulf %44, %50 : vector<8x10xf32>
    %cst_20 = arith.constant dense<0.000000e+00> : vector<8x80xf32>
    %52 = tpu.matmul %51, %9, %cst_20 {dimension_numbers = #tpu.dot_dimension_numbers<[1], [0], [0], [1], [0, 0, 1, 1], [], []>, precision = #tpu.contract_precision<fp32>} : vector<8x10xf32>, vector<10x80xf32>, vector<8x80xf32> -> vector<8x80xf32>
    %53 = vector.extract_strided_slice %52 {offsets = [0, 0], sizes = [8, 40], strides = [1, 1]} : vector<8x80xf32> to vector<8x40xf32>
    %54 = vector.broadcast %31 : vector<8x1xf32> to vector<8x40xf32>
    %55 = arith.mulf %54, %5 : vector<8x40xf32>
    %56 = arith.addf %53, %55 : vector<8x40xf32>
    %57 = arith.addf %56, %26 : vector<8x40xf32>
    %58 = arith.addf %57, %16 : vector<8x40xf32>
    %59 = vector.extract_strided_slice %52 {offsets = [0, 40], sizes = [8, 40], strides = [1, 1]} : vector<8x80xf32> to vector<8x40xf32>
    %60 = vector.extract_strided_slice %58 {offsets = [0, 0], sizes = [8, 30], strides = [1, 1]} : vector<8x40xf32> to vector<8x30xf32>
    %61 = arith.negf %60 : vector<8x30xf32>
    %62 = math.exp %61 : vector<8x30xf32>
    %cst_21 = arith.constant 1.000000e+00 : f32
    %63 = vector.broadcast %cst_21 : f32 to vector<8x30xf32>
    %64 = arith.addf %63, %62 : vector<8x30xf32>
    %65 = arith.divf %63, %64 : vector<8x30xf32>
    %66 = vector.extract_strided_slice %65 {offsets = [0, 0], sizes = [8, 10], strides = [1, 1]} : vector<8x30xf32> to vector<8x10xf32>
    %67 = vector.extract_strided_slice %65 {offsets = [0, 10], sizes = [8, 10], strides = [1, 1]} : vector<8x30xf32> to vector<8x10xf32>
    %68 = vector.extract_strided_slice %65 {offsets = [0, 20], sizes = [8, 10], strides = [1, 1]} : vector<8x30xf32> to vector<8x10xf32>
    %69 = vector.extract_strided_slice %58 {offsets = [0, 30], sizes = [8, 10], strides = [1, 1]} : vector<8x40xf32> to vector<8x10xf32>
    %70 = math.tanh %69 : vector<8x10xf32>
    %71 = arith.mulf %67, %25 : vector<8x10xf32>
    %72 = arith.mulf %66, %70 : vector<8x10xf32>
    %73 = arith.addf %71, %72 : vector<8x10xf32>
    %74 = math.tanh %73 : vector<8x10xf32>
    %75 = arith.mulf %68, %74 : vector<8x10xf32>
    %cst_22 = arith.constant dense<0.000000e+00> : vector<8x41xf32>
    %76 = tpu.matmul %75, %10, %cst_22 {dimension_numbers = #tpu.dot_dimension_numbers<[1], [0], [0], [1], [0, 0, 1, 1], [], []>, precision = #tpu.contract_precision<fp32>} : vector<8x10xf32>, vector<10x41xf32>, vector<8x41xf32> -> vector<8x41xf32>
    %77 = vector.extract_strided_slice %76 {offsets = [0, 40], sizes = [8, 1], strides = [1, 1]} : vector<8x41xf32> to vector<8x1xf32>
    %78 = arith.mulf %31, %8 : vector<8x1xf32>
    %79 = arith.addf %77, %78 : vector<8x1xf32>
    %80 = arith.addf %79, %19 : vector<8x1xf32>
    %81 = vector.extract_strided_slice %76 {offsets = [0, 0], sizes = [8, 40], strides = [1, 1]} : vector<8x41xf32> to vector<8x40xf32>
    %82 = vector.extract_strided_slice %24 {offsets = [0, 0], sizes = [1, 8], strides = [1, 1]} : vector<8x8xf32> to vector<1x8xf32>
    %83 = vector.broadcast %80 : vector<8x1xf32> to vector<8x8xf32>
    %84 = vector.broadcast %82 : vector<1x8xf32> to vector<8x8xf32>
    %85 = arith.mulf %83, %84 : vector<8x8xf32>
    %86 = arith.addf %30, %85 : vector<8x8xf32>
    %87 = vector.extract_strided_slice %29 {offsets = [0, 1], sizes = [8, 1], strides = [1, 1]} : vector<8x8xf32> to vector<8x1xf32>
    %88 = vector.broadcast %87 : vector<8x1xf32> to vector<8x40xf32>
    %89 = arith.mulf %88, %2 : vector<8x40xf32>
    %90 = arith.addf %89, %59 : vector<8x40xf32>
    %91 = arith.addf %90, %13 : vector<8x40xf32>
    %92 = vector.extract_strided_slice %91 {offsets = [0, 0], sizes = [8, 30], strides = [1, 1]} : vector<8x40xf32> to vector<8x30xf32>
    %93 = arith.negf %92 : vector<8x30xf32>
    %94 = math.exp %93 : vector<8x30xf32>
    %cst_23 = arith.constant 1.000000e+00 : f32
    %95 = vector.broadcast %cst_23 : f32 to vector<8x30xf32>
    %96 = arith.addf %95, %94 : vector<8x30xf32>
    %97 = arith.divf %95, %96 : vector<8x30xf32>
    %98 = vector.extract_strided_slice %97 {offsets = [0, 0], sizes = [8, 10], strides = [1, 1]} : vector<8x30xf32> to vector<8x10xf32>
    %99 = vector.extract_strided_slice %97 {offsets = [0, 10], sizes = [8, 10], strides = [1, 1]} : vector<8x30xf32> to vector<8x10xf32>
    %100 = vector.extract_strided_slice %97 {offsets = [0, 20], sizes = [8, 10], strides = [1, 1]} : vector<8x30xf32> to vector<8x10xf32>
    %101 = vector.extract_strided_slice %91 {offsets = [0, 30], sizes = [8, 10], strides = [1, 1]} : vector<8x40xf32> to vector<8x10xf32>
    %102 = math.tanh %101 : vector<8x10xf32>
    %103 = arith.mulf %99, %49 : vector<8x10xf32>
    %104 = arith.mulf %98, %102 : vector<8x10xf32>
    %105 = arith.addf %103, %104 : vector<8x10xf32>
    %106 = math.tanh %105 : vector<8x10xf32>
    %107 = arith.mulf %100, %106 : vector<8x10xf32>
    %cst_24 = arith.constant dense<0.000000e+00> : vector<8x80xf32>
    %108 = tpu.matmul %107, %9, %cst_24 {dimension_numbers = #tpu.dot_dimension_numbers<[1], [0], [0], [1], [0, 0, 1, 1], [], []>, precision = #tpu.contract_precision<fp32>} : vector<8x10xf32>, vector<10x80xf32>, vector<8x80xf32> -> vector<8x80xf32>
    %109 = vector.extract_strided_slice %108 {offsets = [0, 0], sizes = [8, 40], strides = [1, 1]} : vector<8x80xf32> to vector<8x40xf32>
    %110 = vector.broadcast %87 : vector<8x1xf32> to vector<8x40xf32>
    %111 = arith.mulf %110, %5 : vector<8x40xf32>
    %112 = arith.addf %109, %111 : vector<8x40xf32>
    %113 = arith.addf %112, %81 : vector<8x40xf32>
    %114 = arith.addf %113, %16 : vector<8x40xf32>
    %115 = vector.extract_strided_slice %108 {offsets = [0, 40], sizes = [8, 40], strides = [1, 1]} : vector<8x80xf32> to vector<8x40xf32>
    %116 = vector.extract_strided_slice %114 {offsets = [0, 0], sizes = [8, 30], strides = [1, 1]} : vector<8x40xf32> to vector<8x30xf32>
    %117 = arith.negf %116 : vector<8x30xf32>
    %118 = math.exp %117 : vector<8x30xf32>
    %cst_25 = arith.constant 1.000000e+00 : f32
    %119 = vector.broadcast %cst_25 : f32 to vector<8x30xf32>
    %120 = arith.addf %119, %118 : vector<8x30xf32>
    %121 = arith.divf %119, %120 : vector<8x30xf32>
    %122 = vector.extract_strided_slice %121 {offsets = [0, 0], sizes = [8, 10], strides = [1, 1]} : vector<8x30xf32> to vector<8x10xf32>
    %123 = vector.extract_strided_slice %121 {offsets = [0, 10], sizes = [8, 10], strides = [1, 1]} : vector<8x30xf32> to vector<8x10xf32>
    %124 = vector.extract_strided_slice %121 {offsets = [0, 20], sizes = [8, 10], strides = [1, 1]} : vector<8x30xf32> to vector<8x10xf32>
    %125 = vector.extract_strided_slice %114 {offsets = [0, 30], sizes = [8, 10], strides = [1, 1]} : vector<8x40xf32> to vector<8x10xf32>
    %126 = math.tanh %125 : vector<8x10xf32>
    %127 = arith.mulf %123, %73 : vector<8x10xf32>
    %128 = arith.mulf %122, %126 : vector<8x10xf32>
    %129 = arith.addf %127, %128 : vector<8x10xf32>
    %130 = math.tanh %129 : vector<8x10xf32>
    %131 = arith.mulf %124, %130 : vector<8x10xf32>
    %cst_26 = arith.constant dense<0.000000e+00> : vector<8x41xf32>
    %132 = tpu.matmul %131, %10, %cst_26 {dimension_numbers = #tpu.dot_dimension_numbers<[1], [0], [0], [1], [0, 0, 1, 1], [], []>, precision = #tpu.contract_precision<fp32>} : vector<8x10xf32>, vector<10x41xf32>, vector<8x41xf32> -> vector<8x41xf32>
    %133 = vector.extract_strided_slice %132 {offsets = [0, 40], sizes = [8, 1], strides = [1, 1]} : vector<8x41xf32> to vector<8x1xf32>
    %134 = arith.mulf %87, %8 : vector<8x1xf32>
    %135 = arith.addf %133, %134 : vector<8x1xf32>
    %136 = arith.addf %135, %19 : vector<8x1xf32>
    %137 = vector.extract_strided_slice %132 {offsets = [0, 0], sizes = [8, 40], strides = [1, 1]} : vector<8x41xf32> to vector<8x40xf32>
    %138 = vector.extract_strided_slice %24 {offsets = [1, 0], sizes = [1, 8], strides = [1, 1]} : vector<8x8xf32> to vector<1x8xf32>
    %139 = vector.broadcast %136 : vector<8x1xf32> to vector<8x8xf32>
    %140 = vector.broadcast %138 : vector<1x8xf32> to vector<8x8xf32>
    %141 = arith.mulf %139, %140 : vector<8x8xf32>
    %142 = arith.addf %86, %141 : vector<8x8xf32>
    %143 = vector.extract_strided_slice %29 {offsets = [0, 2], sizes = [8, 1], strides = [1, 1]} : vector<8x8xf32> to vector<8x1xf32>
    %144 = vector.broadcast %143 : vector<8x1xf32> to vector<8x40xf32>
    %145 = arith.mulf %144, %2 : vector<8x40xf32>
    %146 = arith.addf %145, %115 : vector<8x40xf32>
    %147 = arith.addf %146, %13 : vector<8x40xf32>
    %148 = vector.extract_strided_slice %147 {offsets = [0, 0], sizes = [8, 30], strides = [1, 1]} : vector<8x40xf32> to vector<8x30xf32>
    %149 = arith.negf %148 : vector<8x30xf32>
    %150 = math.exp %149 : vector<8x30xf32>
    %cst_27 = arith.constant 1.000000e+00 : f32
    %151 = vector.broadcast %cst_27 : f32 to vector<8x30xf32>
    %152 = arith.addf %151, %150 : vector<8x30xf32>
    %153 = arith.divf %151, %152 : vector<8x30xf32>
    %154 = vector.extract_strided_slice %153 {offsets = [0, 0], sizes = [8, 10], strides = [1, 1]} : vector<8x30xf32> to vector<8x10xf32>
    %155 = vector.extract_strided_slice %153 {offsets = [0, 10], sizes = [8, 10], strides = [1, 1]} : vector<8x30xf32> to vector<8x10xf32>
    %156 = vector.extract_strided_slice %153 {offsets = [0, 20], sizes = [8, 10], strides = [1, 1]} : vector<8x30xf32> to vector<8x10xf32>
    %157 = vector.extract_strided_slice %147 {offsets = [0, 30], sizes = [8, 10], strides = [1, 1]} : vector<8x40xf32> to vector<8x10xf32>
    %158 = math.tanh %157 : vector<8x10xf32>
    %159 = arith.mulf %155, %105 : vector<8x10xf32>
    %160 = arith.mulf %154, %158 : vector<8x10xf32>
    %161 = arith.addf %159, %160 : vector<8x10xf32>
    %162 = math.tanh %161 : vector<8x10xf32>
    %163 = arith.mulf %156, %162 : vector<8x10xf32>
    %cst_28 = arith.constant dense<0.000000e+00> : vector<8x80xf32>
    %164 = tpu.matmul %163, %9, %cst_28 {dimension_numbers = #tpu.dot_dimension_numbers<[1], [0], [0], [1], [0, 0, 1, 1], [], []>, precision = #tpu.contract_precision<fp32>} : vector<8x10xf32>, vector<10x80xf32>, vector<8x80xf32> -> vector<8x80xf32>
    %165 = vector.extract_strided_slice %164 {offsets = [0, 0], sizes = [8, 40], strides = [1, 1]} : vector<8x80xf32> to vector<8x40xf32>
    %166 = vector.broadcast %143 : vector<8x1xf32> to vector<8x40xf32>
    %167 = arith.mulf %166, %5 : vector<8x40xf32>
    %168 = arith.addf %165, %167 : vector<8x40xf32>
    %169 = arith.addf %168, %137 : vector<8x40xf32>
    %170 = arith.addf %169, %16 : vector<8x40xf32>
    %171 = vector.extract_strided_slice %164 {offsets = [0, 40], sizes = [8, 40], strides = [1, 1]} : vector<8x80xf32> to vector<8x40xf32>
    %172 = vector.extract_strided_slice %170 {offsets = [0, 0], sizes = [8, 30], strides = [1, 1]} : vector<8x40xf32> to vector<8x30xf32>
    %173 = arith.negf %172 : vector<8x30xf32>
    %174 = math.exp %173 : vector<8x30xf32>
    %cst_29 = arith.constant 1.000000e+00 : f32
    %175 = vector.broadcast %cst_29 : f32 to vector<8x30xf32>
    %176 = arith.addf %175, %174 : vector<8x30xf32>
    %177 = arith.divf %175, %176 : vector<8x30xf32>
    %178 = vector.extract_strided_slice %177 {offsets = [0, 0], sizes = [8, 10], strides = [1, 1]} : vector<8x30xf32> to vector<8x10xf32>
    %179 = vector.extract_strided_slice %177 {offsets = [0, 10], sizes = [8, 10], strides = [1, 1]} : vector<8x30xf32> to vector<8x10xf32>
    %180 = vector.extract_strided_slice %177 {offsets = [0, 20], sizes = [8, 10], strides = [1, 1]} : vector<8x30xf32> to vector<8x10xf32>
    %181 = vector.extract_strided_slice %170 {offsets = [0, 30], sizes = [8, 10], strides = [1, 1]} : vector<8x40xf32> to vector<8x10xf32>
    %182 = math.tanh %181 : vector<8x10xf32>
    %183 = arith.mulf %179, %129 : vector<8x10xf32>
    %184 = arith.mulf %178, %182 : vector<8x10xf32>
    %185 = arith.addf %183, %184 : vector<8x10xf32>
    %186 = math.tanh %185 : vector<8x10xf32>
    %187 = arith.mulf %180, %186 : vector<8x10xf32>
    %cst_30 = arith.constant dense<0.000000e+00> : vector<8x41xf32>
    %188 = tpu.matmul %187, %10, %cst_30 {dimension_numbers = #tpu.dot_dimension_numbers<[1], [0], [0], [1], [0, 0, 1, 1], [], []>, precision = #tpu.contract_precision<fp32>} : vector<8x10xf32>, vector<10x41xf32>, vector<8x41xf32> -> vector<8x41xf32>
    %189 = vector.extract_strided_slice %188 {offsets = [0, 40], sizes = [8, 1], strides = [1, 1]} : vector<8x41xf32> to vector<8x1xf32>
    %190 = arith.mulf %143, %8 : vector<8x1xf32>
    %191 = arith.addf %189, %190 : vector<8x1xf32>
    %192 = arith.addf %191, %19 : vector<8x1xf32>
    %193 = vector.extract_strided_slice %188 {offsets = [0, 0], sizes = [8, 40], strides = [1, 1]} : vector<8x41xf32> to vector<8x40xf32>
    %194 = vector.extract_strided_slice %24 {offsets = [2, 0], sizes = [1, 8], strides = [1, 1]} : vector<8x8xf32> to vector<1x8xf32>
    %195 = vector.broadcast %192 : vector<8x1xf32> to vector<8x8xf32>
    %196 = vector.broadcast %194 : vector<1x8xf32> to vector<8x8xf32>
    %197 = arith.mulf %195, %196 : vector<8x8xf32>
    %198 = arith.addf %142, %197 : vector<8x8xf32>
    %199 = vector.extract_strided_slice %29 {offsets = [0, 3], sizes = [8, 1], strides = [1, 1]} : vector<8x8xf32> to vector<8x1xf32>
    %200 = vector.broadcast %199 : vector<8x1xf32> to vector<8x40xf32>
    %201 = arith.mulf %200, %2 : vector<8x40xf32>
    %202 = arith.addf %201, %171 : vector<8x40xf32>
    %203 = arith.addf %202, %13 : vector<8x40xf32>
    %204 = vector.extract_strided_slice %203 {offsets = [0, 0], sizes = [8, 30], strides = [1, 1]} : vector<8x40xf32> to vector<8x30xf32>
    %205 = arith.negf %204 : vector<8x30xf32>
    %206 = math.exp %205 : vector<8x30xf32>
    %cst_31 = arith.constant 1.000000e+00 : f32
    %207 = vector.broadcast %cst_31 : f32 to vector<8x30xf32>
    %208 = arith.addf %207, %206 : vector<8x30xf32>
    %209 = arith.divf %207, %208 : vector<8x30xf32>
    %210 = vector.extract_strided_slice %209 {offsets = [0, 0], sizes = [8, 10], strides = [1, 1]} : vector<8x30xf32> to vector<8x10xf32>
    %211 = vector.extract_strided_slice %209 {offsets = [0, 10], sizes = [8, 10], strides = [1, 1]} : vector<8x30xf32> to vector<8x10xf32>
    %212 = vector.extract_strided_slice %209 {offsets = [0, 20], sizes = [8, 10], strides = [1, 1]} : vector<8x30xf32> to vector<8x10xf32>
    %213 = vector.extract_strided_slice %203 {offsets = [0, 30], sizes = [8, 10], strides = [1, 1]} : vector<8x40xf32> to vector<8x10xf32>
    %214 = math.tanh %213 : vector<8x10xf32>
    %215 = arith.mulf %211, %161 : vector<8x10xf32>
    %216 = arith.mulf %210, %214 : vector<8x10xf32>
    %217 = arith.addf %215, %216 : vector<8x10xf32>
    %218 = math.tanh %217 : vector<8x10xf32>
    %219 = arith.mulf %212, %218 : vector<8x10xf32>
    %cst_32 = arith.constant dense<0.000000e+00> : vector<8x80xf32>
    %220 = tpu.matmul %219, %9, %cst_32 {dimension_numbers = #tpu.dot_dimension_numbers<[1], [0], [0], [1], [0, 0, 1, 1], [], []>, precision = #tpu.contract_precision<fp32>} : vector<8x10xf32>, vector<10x80xf32>, vector<8x80xf32> -> vector<8x80xf32>
    %221 = vector.extract_strided_slice %220 {offsets = [0, 0], sizes = [8, 40], strides = [1, 1]} : vector<8x80xf32> to vector<8x40xf32>
    %222 = vector.broadcast %199 : vector<8x1xf32> to vector<8x40xf32>
    %223 = arith.mulf %222, %5 : vector<8x40xf32>
    %224 = arith.addf %221, %223 : vector<8x40xf32>
    %225 = arith.addf %224, %193 : vector<8x40xf32>
    %226 = arith.addf %225, %16 : vector<8x40xf32>
    %227 = vector.extract_strided_slice %220 {offsets = [0, 40], sizes = [8, 40], strides = [1, 1]} : vector<8x80xf32> to vector<8x40xf32>
    %228 = vector.extract_strided_slice %226 {offsets = [0, 0], sizes = [8, 30], strides = [1, 1]} : vector<8x40xf32> to vector<8x30xf32>
    %229 = arith.negf %228 : vector<8x30xf32>
    %230 = math.exp %229 : vector<8x30xf32>
    %cst_33 = arith.constant 1.000000e+00 : f32
    %231 = vector.broadcast %cst_33 : f32 to vector<8x30xf32>
    %232 = arith.addf %231, %230 : vector<8x30xf32>
    %233 = arith.divf %231, %232 : vector<8x30xf32>
    %234 = vector.extract_strided_slice %233 {offsets = [0, 0], sizes = [8, 10], strides = [1, 1]} : vector<8x30xf32> to vector<8x10xf32>
    %235 = vector.extract_strided_slice %233 {offsets = [0, 10], sizes = [8, 10], strides = [1, 1]} : vector<8x30xf32> to vector<8x10xf32>
    %236 = vector.extract_strided_slice %233 {offsets = [0, 20], sizes = [8, 10], strides = [1, 1]} : vector<8x30xf32> to vector<8x10xf32>
    %237 = vector.extract_strided_slice %226 {offsets = [0, 30], sizes = [8, 10], strides = [1, 1]} : vector<8x40xf32> to vector<8x10xf32>
    %238 = math.tanh %237 : vector<8x10xf32>
    %239 = arith.mulf %235, %185 : vector<8x10xf32>
    %240 = arith.mulf %234, %238 : vector<8x10xf32>
    %241 = arith.addf %239, %240 : vector<8x10xf32>
    %242 = math.tanh %241 : vector<8x10xf32>
    %243 = arith.mulf %236, %242 : vector<8x10xf32>
    %cst_34 = arith.constant dense<0.000000e+00> : vector<8x41xf32>
    %244 = tpu.matmul %243, %10, %cst_34 {dimension_numbers = #tpu.dot_dimension_numbers<[1], [0], [0], [1], [0, 0, 1, 1], [], []>, precision = #tpu.contract_precision<fp32>} : vector<8x10xf32>, vector<10x41xf32>, vector<8x41xf32> -> vector<8x41xf32>
    %245 = vector.extract_strided_slice %244 {offsets = [0, 40], sizes = [8, 1], strides = [1, 1]} : vector<8x41xf32> to vector<8x1xf32>
    %246 = arith.mulf %199, %8 : vector<8x1xf32>
    %247 = arith.addf %245, %246 : vector<8x1xf32>
    %248 = arith.addf %247, %19 : vector<8x1xf32>
    %249 = vector.extract_strided_slice %244 {offsets = [0, 0], sizes = [8, 40], strides = [1, 1]} : vector<8x41xf32> to vector<8x40xf32>
    %250 = vector.extract_strided_slice %24 {offsets = [3, 0], sizes = [1, 8], strides = [1, 1]} : vector<8x8xf32> to vector<1x8xf32>
    %251 = vector.broadcast %248 : vector<8x1xf32> to vector<8x8xf32>
    %252 = vector.broadcast %250 : vector<1x8xf32> to vector<8x8xf32>
    %253 = arith.mulf %251, %252 : vector<8x8xf32>
    %254 = arith.addf %198, %253 : vector<8x8xf32>
    %255 = vector.extract_strided_slice %29 {offsets = [0, 4], sizes = [8, 1], strides = [1, 1]} : vector<8x8xf32> to vector<8x1xf32>
    %256 = vector.broadcast %255 : vector<8x1xf32> to vector<8x40xf32>
    %257 = arith.mulf %256, %2 : vector<8x40xf32>
    %258 = arith.addf %257, %227 : vector<8x40xf32>
    %259 = arith.addf %258, %13 : vector<8x40xf32>
    %260 = vector.extract_strided_slice %259 {offsets = [0, 0], sizes = [8, 30], strides = [1, 1]} : vector<8x40xf32> to vector<8x30xf32>
    %261 = arith.negf %260 : vector<8x30xf32>
    %262 = math.exp %261 : vector<8x30xf32>
    %cst_35 = arith.constant 1.000000e+00 : f32
    %263 = vector.broadcast %cst_35 : f32 to vector<8x30xf32>
    %264 = arith.addf %263, %262 : vector<8x30xf32>
    %265 = arith.divf %263, %264 : vector<8x30xf32>
    %266 = vector.extract_strided_slice %265 {offsets = [0, 0], sizes = [8, 10], strides = [1, 1]} : vector<8x30xf32> to vector<8x10xf32>
    %267 = vector.extract_strided_slice %265 {offsets = [0, 10], sizes = [8, 10], strides = [1, 1]} : vector<8x30xf32> to vector<8x10xf32>
    %268 = vector.extract_strided_slice %265 {offsets = [0, 20], sizes = [8, 10], strides = [1, 1]} : vector<8x30xf32> to vector<8x10xf32>
    %269 = vector.extract_strided_slice %259 {offsets = [0, 30], sizes = [8, 10], strides = [1, 1]} : vector<8x40xf32> to vector<8x10xf32>
    %270 = math.tanh %269 : vector<8x10xf32>
    %271 = arith.mulf %267, %217 : vector<8x10xf32>
    %272 = arith.mulf %266, %270 : vector<8x10xf32>
    %273 = arith.addf %271, %272 : vector<8x10xf32>
    %274 = math.tanh %273 : vector<8x10xf32>
    %275 = arith.mulf %268, %274 : vector<8x10xf32>
    %cst_36 = arith.constant dense<0.000000e+00> : vector<8x80xf32>
    %276 = tpu.matmul %275, %9, %cst_36 {dimension_numbers = #tpu.dot_dimension_numbers<[1], [0], [0], [1], [0, 0, 1, 1], [], []>, precision = #tpu.contract_precision<fp32>} : vector<8x10xf32>, vector<10x80xf32>, vector<8x80xf32> -> vector<8x80xf32>
    %277 = vector.extract_strided_slice %276 {offsets = [0, 0], sizes = [8, 40], strides = [1, 1]} : vector<8x80xf32> to vector<8x40xf32>
    %278 = vector.broadcast %255 : vector<8x1xf32> to vector<8x40xf32>
    %279 = arith.mulf %278, %5 : vector<8x40xf32>
    %280 = arith.addf %277, %279 : vector<8x40xf32>
    %281 = arith.addf %280, %249 : vector<8x40xf32>
    %282 = arith.addf %281, %16 : vector<8x40xf32>
    %283 = vector.extract_strided_slice %276 {offsets = [0, 40], sizes = [8, 40], strides = [1, 1]} : vector<8x80xf32> to vector<8x40xf32>
    %284 = vector.extract_strided_slice %282 {offsets = [0, 0], sizes = [8, 30], strides = [1, 1]} : vector<8x40xf32> to vector<8x30xf32>
    %285 = arith.negf %284 : vector<8x30xf32>
    %286 = math.exp %285 : vector<8x30xf32>
    %cst_37 = arith.constant 1.000000e+00 : f32
    %287 = vector.broadcast %cst_37 : f32 to vector<8x30xf32>
    %288 = arith.addf %287, %286 : vector<8x30xf32>
    %289 = arith.divf %287, %288 : vector<8x30xf32>
    %290 = vector.extract_strided_slice %289 {offsets = [0, 0], sizes = [8, 10], strides = [1, 1]} : vector<8x30xf32> to vector<8x10xf32>
    %291 = vector.extract_strided_slice %289 {offsets = [0, 10], sizes = [8, 10], strides = [1, 1]} : vector<8x30xf32> to vector<8x10xf32>
    %292 = vector.extract_strided_slice %289 {offsets = [0, 20], sizes = [8, 10], strides = [1, 1]} : vector<8x30xf32> to vector<8x10xf32>
    %293 = vector.extract_strided_slice %282 {offsets = [0, 30], sizes = [8, 10], strides = [1, 1]} : vector<8x40xf32> to vector<8x10xf32>
    %294 = math.tanh %293 : vector<8x10xf32>
    %295 = arith.mulf %291, %241 : vector<8x10xf32>
    %296 = arith.mulf %290, %294 : vector<8x10xf32>
    %297 = arith.addf %295, %296 : vector<8x10xf32>
    %298 = math.tanh %297 : vector<8x10xf32>
    %299 = arith.mulf %292, %298 : vector<8x10xf32>
    %cst_38 = arith.constant dense<0.000000e+00> : vector<8x41xf32>
    %300 = tpu.matmul %299, %10, %cst_38 {dimension_numbers = #tpu.dot_dimension_numbers<[1], [0], [0], [1], [0, 0, 1, 1], [], []>, precision = #tpu.contract_precision<fp32>} : vector<8x10xf32>, vector<10x41xf32>, vector<8x41xf32> -> vector<8x41xf32>
    %301 = vector.extract_strided_slice %300 {offsets = [0, 40], sizes = [8, 1], strides = [1, 1]} : vector<8x41xf32> to vector<8x1xf32>
    %302 = arith.mulf %255, %8 : vector<8x1xf32>
    %303 = arith.addf %301, %302 : vector<8x1xf32>
    %304 = arith.addf %303, %19 : vector<8x1xf32>
    %305 = vector.extract_strided_slice %300 {offsets = [0, 0], sizes = [8, 40], strides = [1, 1]} : vector<8x41xf32> to vector<8x40xf32>
    %306 = vector.extract_strided_slice %24 {offsets = [4, 0], sizes = [1, 8], strides = [1, 1]} : vector<8x8xf32> to vector<1x8xf32>
    %307 = vector.broadcast %304 : vector<8x1xf32> to vector<8x8xf32>
    %308 = vector.broadcast %306 : vector<1x8xf32> to vector<8x8xf32>
    %309 = arith.mulf %307, %308 : vector<8x8xf32>
    %310 = arith.addf %254, %309 : vector<8x8xf32>
    %311 = vector.extract_strided_slice %29 {offsets = [0, 5], sizes = [8, 1], strides = [1, 1]} : vector<8x8xf32> to vector<8x1xf32>
    %312 = vector.broadcast %311 : vector<8x1xf32> to vector<8x40xf32>
    %313 = arith.mulf %312, %2 : vector<8x40xf32>
    %314 = arith.addf %313, %283 : vector<8x40xf32>
    %315 = arith.addf %314, %13 : vector<8x40xf32>
    %316 = vector.extract_strided_slice %315 {offsets = [0, 0], sizes = [8, 30], strides = [1, 1]} : vector<8x40xf32> to vector<8x30xf32>
    %317 = arith.negf %316 : vector<8x30xf32>
    %318 = math.exp %317 : vector<8x30xf32>
    %cst_39 = arith.constant 1.000000e+00 : f32
    %319 = vector.broadcast %cst_39 : f32 to vector<8x30xf32>
    %320 = arith.addf %319, %318 : vector<8x30xf32>
    %321 = arith.divf %319, %320 : vector<8x30xf32>
    %322 = vector.extract_strided_slice %321 {offsets = [0, 0], sizes = [8, 10], strides = [1, 1]} : vector<8x30xf32> to vector<8x10xf32>
    %323 = vector.extract_strided_slice %321 {offsets = [0, 10], sizes = [8, 10], strides = [1, 1]} : vector<8x30xf32> to vector<8x10xf32>
    %324 = vector.extract_strided_slice %321 {offsets = [0, 20], sizes = [8, 10], strides = [1, 1]} : vector<8x30xf32> to vector<8x10xf32>
    %325 = vector.extract_strided_slice %315 {offsets = [0, 30], sizes = [8, 10], strides = [1, 1]} : vector<8x40xf32> to vector<8x10xf32>
    %326 = math.tanh %325 : vector<8x10xf32>
    %327 = arith.mulf %323, %273 : vector<8x10xf32>
    %328 = arith.mulf %322, %326 : vector<8x10xf32>
    %329 = arith.addf %327, %328 : vector<8x10xf32>
    %330 = math.tanh %329 : vector<8x10xf32>
    %331 = arith.mulf %324, %330 : vector<8x10xf32>
    %cst_40 = arith.constant dense<0.000000e+00> : vector<8x80xf32>
    %332 = tpu.matmul %331, %9, %cst_40 {dimension_numbers = #tpu.dot_dimension_numbers<[1], [0], [0], [1], [0, 0, 1, 1], [], []>, precision = #tpu.contract_precision<fp32>} : vector<8x10xf32>, vector<10x80xf32>, vector<8x80xf32> -> vector<8x80xf32>
    %333 = vector.extract_strided_slice %332 {offsets = [0, 0], sizes = [8, 40], strides = [1, 1]} : vector<8x80xf32> to vector<8x40xf32>
    %334 = vector.broadcast %311 : vector<8x1xf32> to vector<8x40xf32>
    %335 = arith.mulf %334, %5 : vector<8x40xf32>
    %336 = arith.addf %333, %335 : vector<8x40xf32>
    %337 = arith.addf %336, %305 : vector<8x40xf32>
    %338 = arith.addf %337, %16 : vector<8x40xf32>
    %339 = vector.extract_strided_slice %332 {offsets = [0, 40], sizes = [8, 40], strides = [1, 1]} : vector<8x80xf32> to vector<8x40xf32>
    %340 = vector.extract_strided_slice %338 {offsets = [0, 0], sizes = [8, 30], strides = [1, 1]} : vector<8x40xf32> to vector<8x30xf32>
    %341 = arith.negf %340 : vector<8x30xf32>
    %342 = math.exp %341 : vector<8x30xf32>
    %cst_41 = arith.constant 1.000000e+00 : f32
    %343 = vector.broadcast %cst_41 : f32 to vector<8x30xf32>
    %344 = arith.addf %343, %342 : vector<8x30xf32>
    %345 = arith.divf %343, %344 : vector<8x30xf32>
    %346 = vector.extract_strided_slice %345 {offsets = [0, 0], sizes = [8, 10], strides = [1, 1]} : vector<8x30xf32> to vector<8x10xf32>
    %347 = vector.extract_strided_slice %345 {offsets = [0, 10], sizes = [8, 10], strides = [1, 1]} : vector<8x30xf32> to vector<8x10xf32>
    %348 = vector.extract_strided_slice %345 {offsets = [0, 20], sizes = [8, 10], strides = [1, 1]} : vector<8x30xf32> to vector<8x10xf32>
    %349 = vector.extract_strided_slice %338 {offsets = [0, 30], sizes = [8, 10], strides = [1, 1]} : vector<8x40xf32> to vector<8x10xf32>
    %350 = math.tanh %349 : vector<8x10xf32>
    %351 = arith.mulf %347, %297 : vector<8x10xf32>
    %352 = arith.mulf %346, %350 : vector<8x10xf32>
    %353 = arith.addf %351, %352 : vector<8x10xf32>
    %354 = math.tanh %353 : vector<8x10xf32>
    %355 = arith.mulf %348, %354 : vector<8x10xf32>
    %cst_42 = arith.constant dense<0.000000e+00> : vector<8x41xf32>
    %356 = tpu.matmul %355, %10, %cst_42 {dimension_numbers = #tpu.dot_dimension_numbers<[1], [0], [0], [1], [0, 0, 1, 1], [], []>, precision = #tpu.contract_precision<fp32>} : vector<8x10xf32>, vector<10x41xf32>, vector<8x41xf32> -> vector<8x41xf32>
    %357 = vector.extract_strided_slice %356 {offsets = [0, 40], sizes = [8, 1], strides = [1, 1]} : vector<8x41xf32> to vector<8x1xf32>
    %358 = arith.mulf %311, %8 : vector<8x1xf32>
    %359 = arith.addf %357, %358 : vector<8x1xf32>
    %360 = arith.addf %359, %19 : vector<8x1xf32>
    %361 = vector.extract_strided_slice %356 {offsets = [0, 0], sizes = [8, 40], strides = [1, 1]} : vector<8x41xf32> to vector<8x40xf32>
    %362 = vector.extract_strided_slice %24 {offsets = [5, 0], sizes = [1, 8], strides = [1, 1]} : vector<8x8xf32> to vector<1x8xf32>
    %363 = vector.broadcast %360 : vector<8x1xf32> to vector<8x8xf32>
    %364 = vector.broadcast %362 : vector<1x8xf32> to vector<8x8xf32>
    %365 = arith.mulf %363, %364 : vector<8x8xf32>
    %366 = arith.addf %310, %365 : vector<8x8xf32>
    %367 = vector.extract_strided_slice %29 {offsets = [0, 6], sizes = [8, 1], strides = [1, 1]} : vector<8x8xf32> to vector<8x1xf32>
    %368 = vector.broadcast %367 : vector<8x1xf32> to vector<8x40xf32>
    %369 = arith.mulf %368, %2 : vector<8x40xf32>
    %370 = arith.addf %369, %339 : vector<8x40xf32>
    %371 = arith.addf %370, %13 : vector<8x40xf32>
    %372 = vector.extract_strided_slice %371 {offsets = [0, 0], sizes = [8, 30], strides = [1, 1]} : vector<8x40xf32> to vector<8x30xf32>
    %373 = arith.negf %372 : vector<8x30xf32>
    %374 = math.exp %373 : vector<8x30xf32>
    %cst_43 = arith.constant 1.000000e+00 : f32
    %375 = vector.broadcast %cst_43 : f32 to vector<8x30xf32>
    %376 = arith.addf %375, %374 : vector<8x30xf32>
    %377 = arith.divf %375, %376 : vector<8x30xf32>
    %378 = vector.extract_strided_slice %377 {offsets = [0, 0], sizes = [8, 10], strides = [1, 1]} : vector<8x30xf32> to vector<8x10xf32>
    %379 = vector.extract_strided_slice %377 {offsets = [0, 10], sizes = [8, 10], strides = [1, 1]} : vector<8x30xf32> to vector<8x10xf32>
    %380 = vector.extract_strided_slice %377 {offsets = [0, 20], sizes = [8, 10], strides = [1, 1]} : vector<8x30xf32> to vector<8x10xf32>
    %381 = vector.extract_strided_slice %371 {offsets = [0, 30], sizes = [8, 10], strides = [1, 1]} : vector<8x40xf32> to vector<8x10xf32>
    %382 = math.tanh %381 : vector<8x10xf32>
    %383 = arith.mulf %379, %329 : vector<8x10xf32>
    %384 = arith.mulf %378, %382 : vector<8x10xf32>
    %385 = arith.addf %383, %384 : vector<8x10xf32>
    %386 = math.tanh %385 : vector<8x10xf32>
    %387 = arith.mulf %380, %386 : vector<8x10xf32>
    %cst_44 = arith.constant dense<0.000000e+00> : vector<8x80xf32>
    %388 = tpu.matmul %387, %9, %cst_44 {dimension_numbers = #tpu.dot_dimension_numbers<[1], [0], [0], [1], [0, 0, 1, 1], [], []>, precision = #tpu.contract_precision<fp32>} : vector<8x10xf32>, vector<10x80xf32>, vector<8x80xf32> -> vector<8x80xf32>
    %389 = vector.extract_strided_slice %388 {offsets = [0, 0], sizes = [8, 40], strides = [1, 1]} : vector<8x80xf32> to vector<8x40xf32>
    %390 = vector.broadcast %367 : vector<8x1xf32> to vector<8x40xf32>
    %391 = arith.mulf %390, %5 : vector<8x40xf32>
    %392 = arith.addf %389, %391 : vector<8x40xf32>
    %393 = arith.addf %392, %361 : vector<8x40xf32>
    %394 = arith.addf %393, %16 : vector<8x40xf32>
    %395 = vector.extract_strided_slice %388 {offsets = [0, 40], sizes = [8, 40], strides = [1, 1]} : vector<8x80xf32> to vector<8x40xf32>
    %396 = vector.extract_strided_slice %394 {offsets = [0, 0], sizes = [8, 30], strides = [1, 1]} : vector<8x40xf32> to vector<8x30xf32>
    %397 = arith.negf %396 : vector<8x30xf32>
    %398 = math.exp %397 : vector<8x30xf32>
    %cst_45 = arith.constant 1.000000e+00 : f32
    %399 = vector.broadcast %cst_45 : f32 to vector<8x30xf32>
    %400 = arith.addf %399, %398 : vector<8x30xf32>
    %401 = arith.divf %399, %400 : vector<8x30xf32>
    %402 = vector.extract_strided_slice %401 {offsets = [0, 0], sizes = [8, 10], strides = [1, 1]} : vector<8x30xf32> to vector<8x10xf32>
    %403 = vector.extract_strided_slice %401 {offsets = [0, 10], sizes = [8, 10], strides = [1, 1]} : vector<8x30xf32> to vector<8x10xf32>
    %404 = vector.extract_strided_slice %401 {offsets = [0, 20], sizes = [8, 10], strides = [1, 1]} : vector<8x30xf32> to vector<8x10xf32>
    %405 = vector.extract_strided_slice %394 {offsets = [0, 30], sizes = [8, 10], strides = [1, 1]} : vector<8x40xf32> to vector<8x10xf32>
    %406 = math.tanh %405 : vector<8x10xf32>
    %407 = arith.mulf %403, %353 : vector<8x10xf32>
    %408 = arith.mulf %402, %406 : vector<8x10xf32>
    %409 = arith.addf %407, %408 : vector<8x10xf32>
    %410 = math.tanh %409 : vector<8x10xf32>
    %411 = arith.mulf %404, %410 : vector<8x10xf32>
    %cst_46 = arith.constant dense<0.000000e+00> : vector<8x41xf32>
    %412 = tpu.matmul %411, %10, %cst_46 {dimension_numbers = #tpu.dot_dimension_numbers<[1], [0], [0], [1], [0, 0, 1, 1], [], []>, precision = #tpu.contract_precision<fp32>} : vector<8x10xf32>, vector<10x41xf32>, vector<8x41xf32> -> vector<8x41xf32>
    %413 = vector.extract_strided_slice %412 {offsets = [0, 40], sizes = [8, 1], strides = [1, 1]} : vector<8x41xf32> to vector<8x1xf32>
    %414 = arith.mulf %367, %8 : vector<8x1xf32>
    %415 = arith.addf %413, %414 : vector<8x1xf32>
    %416 = arith.addf %415, %19 : vector<8x1xf32>
    %417 = vector.extract_strided_slice %412 {offsets = [0, 0], sizes = [8, 40], strides = [1, 1]} : vector<8x41xf32> to vector<8x40xf32>
    %418 = vector.extract_strided_slice %24 {offsets = [6, 0], sizes = [1, 8], strides = [1, 1]} : vector<8x8xf32> to vector<1x8xf32>
    %419 = vector.broadcast %416 : vector<8x1xf32> to vector<8x8xf32>
    %420 = vector.broadcast %418 : vector<1x8xf32> to vector<8x8xf32>
    %421 = arith.mulf %419, %420 : vector<8x8xf32>
    %422 = arith.addf %366, %421 : vector<8x8xf32>
    %423 = vector.extract_strided_slice %29 {offsets = [0, 7], sizes = [8, 1], strides = [1, 1]} : vector<8x8xf32> to vector<8x1xf32>
    %424 = vector.broadcast %423 : vector<8x1xf32> to vector<8x40xf32>
    %425 = arith.mulf %424, %2 : vector<8x40xf32>
    %426 = arith.addf %425, %395 : vector<8x40xf32>
    %427 = arith.addf %426, %13 : vector<8x40xf32>
    %428 = vector.extract_strided_slice %427 {offsets = [0, 0], sizes = [8, 30], strides = [1, 1]} : vector<8x40xf32> to vector<8x30xf32>
    %429 = arith.negf %428 : vector<8x30xf32>
    %430 = math.exp %429 : vector<8x30xf32>
    %cst_47 = arith.constant 1.000000e+00 : f32
    %431 = vector.broadcast %cst_47 : f32 to vector<8x30xf32>
    %432 = arith.addf %431, %430 : vector<8x30xf32>
    %433 = arith.divf %431, %432 : vector<8x30xf32>
    %434 = vector.extract_strided_slice %433 {offsets = [0, 0], sizes = [8, 10], strides = [1, 1]} : vector<8x30xf32> to vector<8x10xf32>
    %435 = vector.extract_strided_slice %433 {offsets = [0, 10], sizes = [8, 10], strides = [1, 1]} : vector<8x30xf32> to vector<8x10xf32>
    %436 = vector.extract_strided_slice %433 {offsets = [0, 20], sizes = [8, 10], strides = [1, 1]} : vector<8x30xf32> to vector<8x10xf32>
    %437 = vector.extract_strided_slice %427 {offsets = [0, 30], sizes = [8, 10], strides = [1, 1]} : vector<8x40xf32> to vector<8x10xf32>
    %438 = math.tanh %437 : vector<8x10xf32>
    %439 = arith.mulf %435, %385 : vector<8x10xf32>
    %440 = arith.mulf %434, %438 : vector<8x10xf32>
    %441 = arith.addf %439, %440 : vector<8x10xf32>
    %442 = math.tanh %441 : vector<8x10xf32>
    %443 = arith.mulf %436, %442 : vector<8x10xf32>
    %cst_48 = arith.constant dense<0.000000e+00> : vector<8x80xf32>
    %444 = tpu.matmul %443, %9, %cst_48 {dimension_numbers = #tpu.dot_dimension_numbers<[1], [0], [0], [1], [0, 0, 1, 1], [], []>, precision = #tpu.contract_precision<fp32>} : vector<8x10xf32>, vector<10x80xf32>, vector<8x80xf32> -> vector<8x80xf32>
    %445 = vector.extract_strided_slice %444 {offsets = [0, 0], sizes = [8, 40], strides = [1, 1]} : vector<8x80xf32> to vector<8x40xf32>
    %446 = vector.broadcast %423 : vector<8x1xf32> to vector<8x40xf32>
    %447 = arith.mulf %446, %5 : vector<8x40xf32>
    %448 = arith.addf %445, %447 : vector<8x40xf32>
    %449 = arith.addf %448, %417 : vector<8x40xf32>
    %450 = arith.addf %449, %16 : vector<8x40xf32>
    %451 = vector.extract_strided_slice %444 {offsets = [0, 40], sizes = [8, 40], strides = [1, 1]} : vector<8x80xf32> to vector<8x40xf32>
    %452 = vector.extract_strided_slice %450 {offsets = [0, 0], sizes = [8, 30], strides = [1, 1]} : vector<8x40xf32> to vector<8x30xf32>
    %453 = arith.negf %452 : vector<8x30xf32>
    %454 = math.exp %453 : vector<8x30xf32>
    %cst_49 = arith.constant 1.000000e+00 : f32
    %455 = vector.broadcast %cst_49 : f32 to vector<8x30xf32>
    %456 = arith.addf %455, %454 : vector<8x30xf32>
    %457 = arith.divf %455, %456 : vector<8x30xf32>
    %458 = vector.extract_strided_slice %457 {offsets = [0, 0], sizes = [8, 10], strides = [1, 1]} : vector<8x30xf32> to vector<8x10xf32>
    %459 = vector.extract_strided_slice %457 {offsets = [0, 10], sizes = [8, 10], strides = [1, 1]} : vector<8x30xf32> to vector<8x10xf32>
    %460 = vector.extract_strided_slice %457 {offsets = [0, 20], sizes = [8, 10], strides = [1, 1]} : vector<8x30xf32> to vector<8x10xf32>
    %461 = vector.extract_strided_slice %450 {offsets = [0, 30], sizes = [8, 10], strides = [1, 1]} : vector<8x40xf32> to vector<8x10xf32>
    %462 = math.tanh %461 : vector<8x10xf32>
    %463 = arith.mulf %459, %409 : vector<8x10xf32>
    %464 = arith.mulf %458, %462 : vector<8x10xf32>
    %465 = arith.addf %463, %464 : vector<8x10xf32>
    %466 = math.tanh %465 : vector<8x10xf32>
    %467 = arith.mulf %460, %466 : vector<8x10xf32>
    %cst_50 = arith.constant dense<0.000000e+00> : vector<8x41xf32>
    %468 = tpu.matmul %467, %10, %cst_50 {dimension_numbers = #tpu.dot_dimension_numbers<[1], [0], [0], [1], [0, 0, 1, 1], [], []>, precision = #tpu.contract_precision<fp32>} : vector<8x10xf32>, vector<10x41xf32>, vector<8x41xf32> -> vector<8x41xf32>
    %469 = vector.extract_strided_slice %468 {offsets = [0, 40], sizes = [8, 1], strides = [1, 1]} : vector<8x41xf32> to vector<8x1xf32>
    %470 = arith.mulf %423, %8 : vector<8x1xf32>
    %471 = arith.addf %469, %470 : vector<8x1xf32>
    %472 = arith.addf %471, %19 : vector<8x1xf32>
    %473 = vector.extract_strided_slice %468 {offsets = [0, 0], sizes = [8, 40], strides = [1, 1]} : vector<8x41xf32> to vector<8x40xf32>
    %474 = vector.extract_strided_slice %24 {offsets = [7, 0], sizes = [1, 8], strides = [1, 1]} : vector<8x8xf32> to vector<1x8xf32>
    %475 = vector.broadcast %472 : vector<8x1xf32> to vector<8x8xf32>
    %476 = vector.broadcast %474 : vector<1x8xf32> to vector<8x8xf32>
    %477 = arith.mulf %475, %476 : vector<8x8xf32>
    %478 = arith.addf %422, %477 : vector<8x8xf32>
    %479 = arith.index_cast %c0_i32 : i32 to index
    %c0_51 = arith.constant 0 : index
    %c0_52 = arith.constant 0 : index
    %480 = vector.load %arg9[%479, %c0_51, %c0_52] : memref<1x8x8xf32, #tpu.memory_space<vmem>>, vector<1x8x8xf32>
    %481 = vector.shape_cast %480 : vector<1x8x8xf32> to vector<8x8xf32>
    %482 = vector.shape_cast %478 : vector<8x8xf32> to vector<1x8x8xf32>
    tpu.vector_store %arg9[%479, %c0_51, %c0_52], %482 {strides = array<i32>} : memref<1x8x8xf32, #tpu.memory_space<vmem>>, vector<1x8x8xf32>,
    %c1_i32 = arith.constant 1 : i32
    return
  }
}

</mosaic_0001>

<bundles_post_ra>
// kernel: model_forward.1
= control target key start
LH: loop header
LB: loop body
LE: loop exit
PB: predicated region body
PF: predicated region fallthrough
CT: control target
= control target key end

     0   :  { %v9782_v0 = vmov 0   ;;  %s9783_s15 = smov 98   ;;  %s9784_s16 = smov 10   ;;  %vm127_vm0 = vcmask 1041408   ;;  %v9785_v23 = vmov 0.0|0.0   ;;  %vm9786_vm1 = vmmov 0   ;;  %s10590_s0 = inlined_call_operand.vmem [shape: f32[1,8,8], index: 0, kind: input, shape index: {}]   ;;  %s10591_s1 = inlined_call_operand.vmem [shape: f32[1,40], index: 1, kind: input, shape index: {}]   ;;  %s10592_s6 = inlined_call_operand.vmem [shape: f32[1,40], index: 6, kind: input, shape index: {}]   ;;  %s10593_s4 = inlined_call_operand.vmem [shape: f32[10,80], index: 4, kind: input, shape index: {}]   ;;  %s10594_s2 = inlined_call_operand.vmem [shape: f32[1,40], index: 2, kind: input, shape index: {}]   ;;  %s10595_s7 = inlined_call_operand.vmem [shape: f32[1,40], index: 7, kind: input, shape index: {}]   ;;  %s10596_s5 = inlined_call_operand.vmem [shape: f32[10,41], index: 5, kind: input, shape index: {}]   ;;  %s10597_s3 = inlined_call_operand.<no memory space> [shape: f32[1,1], index: 3, kind: input, shape index: {}]   ;;  %s10598_s8 = inlined_call_operand.<no memory space> [shape: f32[1,1], index: 8, kind: input, shape index: {}]   ;;  %s10599_s9 = inlined_call_operand.vmem [shape: f32[1,8,8], index: 9, kind: output, shape index: {}]  }
   0x1   :  { %9638 = vset.pattern.permute.xlu0 %v9782_v0  ;;  %v9866_v1 = vld [vmem:[%s10590_s0] sm:$0xff]  ;;  %v58_v18 = vld [vmem:[%s10593_s4 + $0x8] sm:$0x3]  ;;  %9179 = vmatprep.subr.bf16.mxu0 %v9785_v23  ;;  %v9787_v25 = vmov 0.0   ;;  %v9789_v39 = vmov 1   ;;  %vm124_vm2 = vcmask 80896  }
   0x2   :  { %91 = vperm.xlu0 %9638, %v9866_v1   ;;  %v9872_v2 = vld [vmem:[%s10591_s1] ss:$0 sm:$0xff]  ;;  %v129_v20 = vsel %vm127_vm0, %v58_v18, 0  ;;  %8511 = vmatprep.mubr.msk.f32.mxu0 %vm9786_vm1, %v9787_v25  ;;  %s9790_s21 = smov 88   ;;  %s9798_s19 = smov 3   ;;  %vm8190_vm4 = vcmask 64512  }
   0x3   :  { %v9877_v3 = vld [vmem:[%s10592_s6] ss:$0 sm:$0xff]  ;;  %v135_v22 = vand.u32 4294901760, %v129_v20  ;;  %9197 = vmatprep.subr.bf16.mxu1 %v9785_v23  ;;  %8553 = vmatprep.mubr.msk.f32.mxu1 %vm9786_vm1, %v9787_v25  ;;  %s9799_s20 = smov 5   ;;  %s9804_s22 = smov 4  }
   0x4   :  { %v57_v19 = vld [vmem:[%s10593_s4] sm:$0xff]  ;;  %s9788_s4 = smov 108   ;;  %9639 = vset.pattern.permute.xlu1 %v9789_v39  ;;  %s9805_s23 = smov 6  }
   0x5   :  { %v132_v21 = vand.u32 4294901760, %v57_v19  ;;  %v217_v27 = vsub.f32 %v129_v20, %v135_v22  ;;  %v9951_v61 = vld [vmem:[%s10594_s2] ss:$0 sm:$0xff]  ;;  %s9806_s24 = smov 40   ;;  %s9808_s25 = smov 35  }
   0x6   :  { %s9809_s26 = smov 33   ;;  %s9810_s27 = smov 38  }
   0x7   :  { %v9898_v24 = vpack.c.bf16 %v135_v22, %v132_v21  ;;  %v210_v26 = vsub.f32 %v57_v19, %v132_v21  ;;  %v218_v29 = vand.u32 4294901760, %v217_v27  ;;  %s9811_s28 = smov 36   ;;  %s9812_s30 = smov 34  }
   0x9   :  { %9181 = vmatpush3.bf16.msra.mxu0 %v9898_v24  ;;  %v211_v28 = vand.u32 4294901760, %v210_v26  ;;  %v219_v32 = vsub.f32 %v217_v27, %v218_v29  ;;  %v9910_v37 = vpack.c.bf16 %v217_v27, %v210_v26 }
   0xa   :  { %9182 = vmatprep.subr.bf16.mxu0 %v9785_v23 }
   0xb   :  { %v212_v31 = vsub.f32 %v210_v26, %v211_v28  ;;  %v220_v35 = vand.u32 4294901760, %v219_v32  ;;  %v9912_v38 = vpack.c.bf16 %v218_v29, %v211_v28 }
   0xd   :  { %v213_v34 = vand.u32 4294901760, %v212_v31 }
   0xf   :  { %v9908_v36 = vpack.c.bf16 %v220_v35, %v213_v34  ;;  %v59_v34 = vld [vmem:[%s10596_s5] sm:$0xff] }
  0x10   :  { %v627_v39 = vand.u32 4294901760, %v59_v34 }
  0x81   :  { %v9879_v4 = vpop.permute.xlu0 %91 }
  0x82   :  { %v94_v5 = vmul.f32 %v9872_v2, %v9879_v4  ;;  %v590_v62 = vmul.f32 %v9951_v61, %v9879_v4 }
  0x84   :  { %v96_v6 = vadd.f32 %v9877_v3, %v94_v5  ;;  %v9959_v5 = vld [vmem:[%s10595_s7] ss:$0 sm:$0xff] }
  0x86   :  { %9648 = vtanh.f32 %v96_v6  ;;  %v8203_v8 = vmul.f32 -1.442695, %v96_v6 }
  0x88   :  { %9650 = vpow2.f32 %v8203_v8 }
  0x90   :  { %v9649_v7 = vpop.eup %9648 }
  0x91   :  { %106 = vrot.lane.b32.xlu0 %v9649_v7, %s9783_s15 }
  0x92   :  { %v9651_v9 = vpop.eup %9650 }
  0x93   :  { %v100_v10 = vadd.f32 1.0, %v9651_v9 }
  0x95   :  { %9652 = vrcp.f32 %v100_v10 }
  0x9f   :  { %v9653_v11 = vpop.eup %9652 }
  0xa0   :  { %v104_v14 = vmul.f32 0.0, %v9653_v11 }
 0x103   :  { %v107_v12 = vpop.permute.xlu0 %106 }
 0x104   :  { %v109_v13 = vmul.f32 %v9653_v11, %v107_v12 }
 0x106   :  { %111 = vrot.lane.b32.xlu1 %v109_v13, %s9784_s16 }
 0x178   :  { %v112_v15 = vpop.permute.xlu1 %111 }
 0x179   :  { %v9886_v16 = vadd.f32 %v112_v15, %v104_v14 }
 0x17b   :  { %9654 = vtanh.f32 %v9886_v16 }
 0x185   :  { %v9655_v17 = vpop.eup %9654 }
 0x186   :  { %117 = vrot.lane.b32.xlu1 %v9655_v17, %s9784_s16 }
 0x18a   :  { %1107 = vperm.xlu1 %9639, %v9866_v1  }
 0x1f8   :  { %v118_v30 = vpop.permute.xlu1 %117 }
 0x1f9   :  { %v120_v33 = vmul.f32 %v9653_v11, %v118_v30  ;;  %v9791_v30 = vmov 2  }
 0x1fa   :  { %9640 = vset.pattern.permute.xlu1 %v9791_v30 }
 0x1fb   :  { %122 = vrot.lane.b32.xlu0 %v120_v33, %s9788_s4  ;;  %v60_v33 = vld [vmem:[%s10596_s5 + $0x8] sm:$0x3] }
 0x1fc   :  { %v624_v35 = vsel %vm127_vm0, %v60_v33, 0 }
 0x209   :  { %v9941_v49 = vpop.permute.xlu1 %1107 }
 0x20a   :  { %v1110_v50 = vmul.f32 %v9872_v2, %v9941_v49 }
 0x26d   :  { %v123_v40 = vpop.permute.xlu0 %122 }
 0x26e   :  { %v125_v41 = vsel %vm124_vm2, %v123_v40, 0  ;;  %v630_v40 = vand.u32 4294901760, %v624_v35 }
 0x26f   :  { %v198_v42 = vand.u32 4294901760, %v125_v41 }
 0x271   :  { %v199_v43 = vsub.f32 %v125_v41, %v198_v42  ;;  %v10006_v41 = vpack.c.bf16 %v630_v40, %v627_v39 }
 0x273   :  { %v200_v44 = vand.u32 4294901760, %v199_v43  ;;  %9199 = vmatpush3.bf16.msra.mxu1 %v10006_v41 }
 0x274   :  { %9200 = vmatprep.subr.bf16.mxu1 %v9785_v23 }
 0x275   :  { %v201_v45 = vsub.f32 %v199_v43, %v200_v44 }
 0x277   :  { %v202_v46 = vand.u32 4294901760, %v201_v45 }
 0x279   :  { %8512 = vmatmul.mubr.f32.vlgmr.msra.gmra.mrb[0].mxu0 %v202_v46 }
 0x27a   :  { %9184 = vmatpush3.bf16.msra.mxu0 %v9908_v36  ;;  %8518 = vmatprep.mubr.msk.f32.mxu0 %vm9786_vm1, %v9787_v25 }
 0x27b   :  { %9185 = vmatprep.subr.bf16.mxu0 %v9785_v23 }
 0x281   :  { %8519 = vmatmul.mubr.f32.vlgmr.msra.gmra.mrb[0].mxu0 %v198_v42 }
 0x282   :  { %9187 = vmatpush3.bf16.msra.mxu0 %v9910_v37  ;;  %8525 = vmatprep.mubr.msk.f32.mxu0 %vm9786_vm1, %v9787_v25 }
 0x283   :  { %9188 = vmatprep.subr.bf16.mxu0 %v9785_v23 }
 0x289   :  { %8526 = vmatmul.mubr.f32.vlgmr.msra.gmra.mrb[0].mxu0 %v199_v43  ;;  %v712_v43 = vsub.f32 %v624_v35, %v630_v40 }
 0x28a   :  { %9190 = vmatpush3.bf16.msra.mxu0 %v9898_v24  ;;  %8532 = vmatprep.mubr.msk.f32.mxu0 %vm9786_vm1, %v9787_v25 }
 0x28b   :  { %9191 = vmatprep.subr.bf16.mxu0 %v9785_v23  ;;  %v713_v45 = vand.u32 4294901760, %v712_v43 }
 0x291   :  { %8533 = vmatmul.mubr.f32.vlgmr.msra.gmra.mrb[0].mxu0 %v200_v44 }
 0x292   :  { %9193 = vmatpush3.bf16.msra.mxu0 %v9912_v38  ;;  %8539 = vmatprep.mubr.msk.f32.mxu0 %vm9786_vm1, %v9787_v25 }
 0x293   :  { %9194 = vmatprep.subr.bf16.mxu0 %v9785_v23 }
 0x299   :  { %8540 = vmatmul.mubr.f32.vlgmr.msra.gmra.mrb[0].mxu0 %v198_v42 }
 0x29a   :  { %9196 = vmatpush3.bf16.msra.mxu0 %v9898_v24  ;;  %8546 = vmatprep.mubr.msk.f32.mxu0 %vm9786_vm1, %v9787_v25 }
 0x29b   :  { %9215 = vmatprep.subr.bf16.mxu0 %v9785_v23 }
 0x2a1   :  { %8547 = vmatmul.mubr.f32.vlgmr.msra.gmra.mrb[0].mxu0 %v198_v42  ;;  %v705_v42 = vsub.f32 %v59_v34, %v627_v39 }
 0x2a2   :  { %9217 = vmatpush3.bf16.msra.mxu0 %v9898_v24  ;;  %8595 = vmatprep.mubr.msk.f32.mxu0 %vm9786_vm1, %v9787_v25 }
 0x2a3   :  { %9218 = vmatprep.subr.bf16.mxu0 %v9785_v23  ;;  %v706_v44 = vand.u32 4294901760, %v705_v42 }
 0x374   :  { %v586_v47 = vpop.f32.mrb[0].mxu0 }
 0x375   :  { %1112 = vrot.lane.b32.xlu0 %v586_v47, %s9790_s21  ;;  %v8548_v48 = vpop.f32.mrb[1].mxu0  ;;  %v591_v63 = vadd.f32 %v590_v62, %v586_v47  ;;  %v707_v47 = vsub.f32 %v705_v42, %v706_v44 }
 0x376   :  { %v714_v48 = vsub.f32 %v712_v43, %v713_v45 }
 0x377   :  { %v593_v8 = vadd.f32 %v9959_v5, %v591_v63 }
 0x379   :  { %v8204_v10 = vmul.f32 -1.442695, %v593_v8 }
 0x3e7   :  { %v1113_v51 = vpop.permute.xlu0 %1112 }
 0x3e8   :  { %v1115_v52 = vadd.f32 %v1113_v51, %v1110_v50  ;;  %v708_v51 = vand.u32 4294901760, %v707_v47 }
 0x3ea   :  { %v1116_v53 = vadd.f32 %v9877_v3, %v1115_v52  ;;  %v715_v52 = vand.u32 4294901760, %v714_v48 }
 0x3ec   :  { %9656 = vtanh.f32 %v1116_v53  ;;  %v8205_v55 = vmul.f32 -1.442695, %v1116_v53  ;;  %v10011_v53 = vpack.c.bf16 %v715_v52, %v708_v51 }
 0x3ee   :  { %9658 = vpow2.f32 %v8205_v55  ;;  %v10015_v55 = vpack.c.bf16 %v713_v45, %v706_v44 }
 0x3f6   :  { %v9657_v54 = vpop.eup %9656 }
 0x3f7   :  { %1126 = vrot.lane.b32.xlu1 %v9657_v54, %s9783_s15  ;;  %v10013_v54 = vpack.c.bf16 %v712_v43, %v705_v42 }
 0x3f8   :  { %v9659_v56 = vpop.eup %9658 }
 0x3f9   :  { %v1120_v57 = vadd.f32 1.0, %v9659_v56 }
 0x3fb   :  { %9660 = vrcp.f32 %v1120_v57 }
 0x405   :  { %v9661_v58 = vpop.eup %9660 }
 0x406   :  { %v1124_v0 = vmul.f32 %v9661_v58, %v9886_v16 }
 0x469   :  { %v1127_v59 = vpop.permute.xlu1 %1126 }
 0x46a   :  { %v1129_v60 = vmul.f32 %v9661_v58, %v1127_v59 }
 0x46c   :  { %1131 = vrot.lane.b32.xlu0 %v1129_v60, %s9784_s16 }
 0x4de   :  { %v1132_v6 = vpop.permute.xlu0 %1131 }
 0x4df   :  { %v9961_v7 = vadd.f32 %v1132_v6, %v1124_v0 }
 0x4e1   :  { %9662 = vtanh.f32 %v9961_v7 }
 0x4e2   :  { %9664 = vtanh.f32 %v593_v8 }
 0x4e3   :  { %9666 = vpow2.f32 %v8204_v10 }
 0x4eb   :  { %v9663_v9 = vpop.eup %9662 }
 0x4ec   :  { %1137 = vrot.lane.b32.xlu1 %v9663_v9, %s9784_s16  ;;  %v9665_v4 = vpop.eup %9664 }
 0x4ed   :  { %v9667_v11 = vpop.eup %9666 }
 0x4ee   :  { %v597_v12 = vadd.f32 1.0, %v9667_v11 }
 0x4f0   :  { %603 = vrot.lane.b32.xlu1 %v9665_v4, %s9783_s15  ;;  %9668 = vrcp.f32 %v597_v12 }
 0x4fa   :  { %v9669_v15 = vpop.eup %9668 }
 0x4fb   :  { %v601_v21 = vmul.f32 0.0, %v9669_v15 }
 0x55e   :  { %v1138_v13 = vpop.permute.xlu1 %1137 }
 0x55f   :  { %v1140_v14 = vmul.f32 %v9661_v58, %v1138_v13 }
 0x561   :  { %1142 = vrot.lane.b32.xlu0 %v1140_v14, %s9788_s4 }
 0x562   :  { %v604_v16 = vpop.permute.xlu1 %603 }
 0x563   :  { %v606_v17 = vmul.f32 %v9669_v15, %v604_v16 }
 0x565   :  { %608 = vrot.lane.b32.xlu0 %v606_v17, %s9784_s16 }
 0x5d3   :  { %v1143_v18 = vpop.permute.xlu0 %1142 }
 0x5d4   :  { %v1144_v19 = vsel %vm124_vm2, %v1143_v18, 0  ;;  %v1605_v18 = vmul.f32 %v9951_v61, %v9941_v49 }
 0x5d5   :  { %v1213_v20 = vand.u32 4294901760, %v1144_v19 }
 0x5d7   :  { %v1214_v22 = vsub.f32 %v1144_v19, %v1213_v20  ;;  %v609_v26 = vpop.permute.xlu0 %608 }
 0x5d8   :  { %v9970_v27 = vadd.f32 %v609_v26, %v601_v21 }
 0x5d9   :  { %v1215_v28 = vand.u32 4294901760, %v1214_v22 }
 0x5da   :  { %9670 = vtanh.f32 %v9970_v27 }
 0x5db   :  { %v1216_v29 = vsub.f32 %v1214_v22, %v1215_v28 }
 0x5dd   :  { %v1217_v31 = vand.u32 4294901760, %v1216_v29 }
 0x5df   :  { %8596 = vmatmul.mubr.f32.vlgmr.msra.gmra.mrb[2].mxu0 %v1217_v31 }
 0x5e0   :  { %9220 = vmatpush3.bf16.msra.mxu0 %v9908_v36  ;;  %8602 = vmatprep.mubr.msk.f32.mxu0 %vm9786_vm1, %v9787_v25 }
 0x5e1   :  { %9221 = vmatprep.subr.bf16.mxu0 %v9785_v23 }
 0x5e4   :  { %v9671_v32 = vpop.eup %9670 }
 0x5e5   :  { %614 = vrot.lane.b32.xlu1 %v9671_v32, %s9784_s16 }
 0x5e7   :  { %8603 = vmatmul.mubr.f32.vlgmr.msra.gmra.mrb[2].mxu0 %v1213_v20 }
 0x5e8   :  { %9223 = vmatpush3.bf16.msra.mxu0 %v9910_v37  ;;  %8609 = vmatprep.mubr.msk.f32.mxu0 %vm9786_vm1, %v9787_v25 }
 0x5e9   :  { %9224 = vmatprep.subr.bf16.mxu0 %v9785_v23  ;;  %2119 = vperm.xlu1 %9640, %v9866_v1  }
 0x5ef   :  { %8610 = vmatmul.mubr.f32.vlgmr.msra.gmra.mrb[2].mxu0 %v1214_v22 }
 0x5f0   :  { %9226 = vmatpush3.bf16.msra.mxu0 %v9898_v24  ;;  %8616 = vmatprep.mubr.msk.f32.mxu0 %vm9786_vm1, %v9787_v25 }
 0x5f1   :  { %9227 = vmatprep.subr.bf16.mxu0 %v9785_v23 }
 0x5f7   :  { %8617 = vmatmul.mubr.f32.vlgmr.msra.gmra.mrb[2].mxu0 %v1215_v28 }
 0x5f8   :  { %9229 = vmatpush3.bf16.msra.mxu0 %v9912_v38  ;;  %8623 = vmatprep.mubr.msk.f32.mxu0 %vm9786_vm1, %v9787_v25 }
 0x5f9   :  { %9230 = vmatprep.subr.bf16.mxu0 %v9785_v23 }
 0x5ff   :  { %8624 = vmatmul.mubr.f32.vlgmr.msra.gmra.mrb[2].mxu0 %v1213_v20 }
 0x600   :  { %9232 = vmatpush3.bf16.msra.mxu0 %v9898_v24  ;;  %8630 = vmatprep.mubr.msk.f32.mxu0 %vm9786_vm1, %v9787_v25 }
 0x601   :  { %9251 = vmatprep.subr.bf16.mxu0 %v9785_v23 }
 0x607   :  { %8631 = vmatmul.mubr.f32.vlgmr.msra.gmra.mrb[2].mxu0 %v1213_v20 }
 0x608   :  { %9253 = vmatpush3.bf16.msra.mxu0 %v9898_v24  ;;  %8679 = vmatprep.mubr.msk.f32.mxu0 %vm9786_vm1, %v9787_v25 }
 0x609   :  { %9254 = vmatprep.subr.bf16.mxu0 %v9785_v23 }
 0x657   :  { %v615_v46 = vpop.permute.xlu1 %614 }
 0x658   :  { %v617_v50 = vmul.f32 %v9669_v15, %v615_v46 }
 0x65a   :  { %619 = vrot.lane.b32.xlu0 %v617_v50, %s9788_s4 }
 0x668   :  { %v10043_v8 = vpop.permute.xlu1 %2119 }
 0x669   :  { %v2122_v9 = vmul.f32 %v9872_v2, %v10043_v8 }
 0x6cc   :  { %v620_v56 = vpop.permute.xlu0 %619 }
 0x6cd   :  { %v621_v57 = vsel %vm124_vm2, %v620_v56, 0 }
 0x6ce   :  { %v693_v58 = vand.u32 4294901760, %v621_v57 }
 0x6d0   :  { %v694_v59 = vsub.f32 %v621_v57, %v693_v58  ;;  %v9792_v57 = vmov 3  }
 0x6d1   :  { %9641 = vset.pattern.permute.xlu1 %v9792_v57 }
 0x6d2   :  { %v695_v60 = vand.u32 4294901760, %v694_v59 }
 0x6d4   :  { %v696_v62 = vsub.f32 %v694_v59, %v695_v60 }
 0x6d6   :  { %v697_v63 = vand.u32 4294901760, %v696_v62 }
 0x6d8   :  { %8554 = vmatmul.mubr.f32.vlgmr.msra.gmra.mrb[0].mxu1 %v697_v63 }
 0x6d9   :  { %9202 = vmatpush3.bf16.msra.mxu1 %v10011_v53  ;;  %8560 = vmatprep.mubr.msk.f32.mxu1 %vm9786_vm1, %v9787_v25 }
 0x6da   :  { %v1601_v0 = vpop.f32.mrb[2].mxu0  ;;  %9203 = vmatprep.subr.bf16.mxu1 %v9785_v23 }
 0x6db   :  { %v8632_v6 = vpop.f32.mrb[3].mxu0  ;;  %2124 = vrot.lane.b32.xlu0 %v1601_v0, %s9790_s21  ;;  %v1606_v20 = vadd.f32 %v1605_v18, %v1601_v0 }
 0x6e0   :  { %8561 = vmatmul.mubr.f32.vlgmr.msra.gmra.mrb[0].mxu1 %v693_v58 }
 0x6e1   :  { %9205 = vmatpush3.bf16.msra.mxu1 %v10013_v54  ;;  %8567 = vmatprep.mubr.msk.f32.mxu1 %vm9786_vm1, %v9787_v25 }
 0x6e2   :  { %9206 = vmatprep.subr.bf16.mxu1 %v9785_v23 }
 0x6e8   :  { %8568 = vmatmul.mubr.f32.vlgmr.msra.gmra.mrb[0].mxu1 %v694_v59 }
 0x6e9   :  { %9208 = vmatpush3.bf16.msra.mxu1 %v10006_v41  ;;  %8574 = vmatprep.mubr.msk.f32.mxu1 %vm9786_vm1, %v9787_v25 }
 0x6ea   :  { %9209 = vmatprep.subr.bf16.mxu1 %v9785_v23 }
 0x6f0   :  { %8575 = vmatmul.mubr.f32.vlgmr.msra.gmra.mrb[0].mxu1 %v695_v60 }
 0x6f1   :  { %9211 = vmatpush3.bf16.msra.mxu1 %v10015_v55  ;;  %8581 = vmatprep.mubr.msk.f32.mxu1 %vm9786_vm1, %v9787_v25 }
 0x6f2   :  { %9212 = vmatprep.subr.bf16.mxu1 %v9785_v23 }
 0x6f8   :  { %8582 = vmatmul.mubr.f32.vlgmr.msra.gmra.mrb[0].mxu1 %v693_v58 }
 0x6f9   :  { %9214 = vmatpush3.bf16.msra.mxu1 %v10006_v41  ;;  %8588 = vmatprep.mubr.msk.f32.mxu1 %vm9786_vm1, %v9787_v25 }
 0x6fa   :  { %9233 = vmatprep.subr.bf16.mxu1 %v9785_v23 }
 0x700   :  { %8589 = vmatmul.mubr.f32.vlgmr.msra.gmra.mrb[0].mxu1 %v693_v58 }
 0x701   :  { %9235 = vmatpush3.bf16.msra.mxu1 %v10006_v41  ;;  %8637 = vmatprep.mubr.msk.f32.mxu1 %vm9786_vm1, %v9787_v25 }
 0x702   :  { %9236 = vmatprep.subr.bf16.mxu1 %v9785_v23 }
 0x74d   :  { %v2125_v4 = vpop.permute.xlu0 %2124 }
 0x74e   :  { %v2127_v10 = vadd.f32 %v2125_v4, %v2122_v9 }
 0x750   :  { %v2128_v11 = vadd.f32 %v9877_v3, %v2127_v10 }
 0x752   :  { %9672 = vtanh.f32 %v2128_v11  ;;  %v8207_v13 = vmul.f32 -1.442695, %v2128_v11 }
 0x754   :  { %9674 = vpow2.f32 %v8207_v13 }
 0x75c   :  { %v9673_v12 = vpop.eup %9672 }
 0x75d   :  { %2138 = vrot.lane.b32.xlu1 %v9673_v12, %s9783_s15 }
 0x75e   :  { %v9675_v14 = vpop.eup %9674 }
 0x75f   :  { %v2132_v15 = vadd.f32 1.0, %v9675_v14 }
 0x761   :  { %9676 = vrcp.f32 %v2132_v15 }
 0x76b   :  { %v9677_v16 = vpop.eup %9676 }
 0x76c   :  { %v2136_v28 = vmul.f32 %v9677_v16, %v9961_v7 }
 0x7cf   :  { %v2139_v17 = vpop.permute.xlu1 %2138 }
 0x7d0   :  { %v2141_v19 = vmul.f32 %v9677_v16, %v2139_v17 }
 0x7d2   :  { %2143 = vrot.lane.b32.xlu0 %v2141_v19, %s9784_s16 }
 0x7d3   :  { %v10052_v21 = vpop.f32.mrb[0].mxu1 }
 0x7d4   :  { %v1607_v22 = vadd.f32 %v1606_v20, %v10052_v21  ;;  %v8590_v26 = vpop.f32.mrb[1].mxu1 }
 0x7d6   :  { %v1608_v31 = vadd.f32 %v9959_v5, %v1607_v22 }
 0x7d8   :  { %v8206_v33 = vmul.f32 -1.442695, %v1608_v31 }
 0x844   :  { %v2144_v29 = vpop.permute.xlu0 %2143 }
 0x845   :  { %v10056_v30 = vadd.f32 %v2144_v29, %v2136_v28  ;;  %v2617_v29 = vmul.f32 %v9951_v61, %v10043_v8 }
 0x847   :  { %9678 = vtanh.f32 %v10056_v30 }
 0x848   :  { %9680 = vtanh.f32 %v1608_v31 }
 0x849   :  { %9682 = vpow2.f32 %v8206_v33 }
 0x851   :  { %v9679_v49 = vpop.eup %9678 }
 0x852   :  { %2149 = vrot.lane.b32.xlu1 %v9679_v49, %s9784_s16  ;;  %v9681_v32 = vpop.eup %9680 }
 0x853   :  { %v9683_v34 = vpop.eup %9682 }
 0x854   :  { %v1612_v35 = vadd.f32 1.0, %v9683_v34 }
 0x856   :  { %1618 = vrot.lane.b32.xlu1 %v9681_v32, %s9783_s15  ;;  %9684 = vrcp.f32 %v1612_v35 }
 0x860   :  { %v9685_v40 = vpop.eup %9684 }
 0x861   :  { %v1616_v47 = vmul.f32 %v9685_v40, %v9970_v27 }
 0x8c4   :  { %v2150_v7 = vpop.permute.xlu1 %2149 }
 0x8c5   :  { %v2152_v39 = vmul.f32 %v9677_v16, %v2150_v7 }
 0x8c7   :  { %2154 = vrot.lane.b32.xlu0 %v2152_v39, %s9788_s4 }
 0x8c8   :  { %v1619_v42 = vpop.permute.xlu1 %1618 }
 0x8c9   :  { %v1621_v43 = vmul.f32 %v9685_v40, %v1619_v42 }
 0x8cb   :  { %1623 = vrot.lane.b32.xlu0 %v1621_v43, %s9784_s16 }
 0x939   :  { %v2155_v44 = vpop.permute.xlu0 %2154 }
 0x93a   :  { %v2156_v45 = vsel %vm124_vm2, %v2155_v44, 0 }
 0x93b   :  { %v2225_v46 = vand.u32 4294901760, %v2156_v45 }
 0x93d   :  { %v2226_v48 = vsub.f32 %v2156_v45, %v2225_v46  ;;  %v1624_v50 = vpop.permute.xlu0 %1623 }
 0x93e   :  { %v10066_v51 = vadd.f32 %v1624_v50, %v1616_v47 }
 0x93f   :  { %v2227_v52 = vand.u32 4294901760, %v2226_v48 }
 0x940   :  { %9686 = vtanh.f32 %v10066_v51 }
 0x941   :  { %v2228_v56 = vsub.f32 %v2226_v48, %v2227_v52 }
 0x943   :  { %v2229_v58 = vand.u32 4294901760, %v2228_v56 }
 0x945   :  { %8680 = vmatmul.mubr.f32.vlgmr.msra.gmra.mrb[4].mxu0 %v2229_v58 }
 0x946   :  { %9256 = vmatpush3.bf16.msra.mxu0 %v9908_v36  ;;  %8686 = vmatprep.mubr.msk.f32.mxu0 %vm9786_vm1, %v9787_v25 }
 0x947   :  { %9257 = vmatprep.subr.bf16.mxu0 %v9785_v23 }
 0x94a   :  { %v9687_v27 = vpop.eup %9686 }
 0x94b   :  { %1629 = vrot.lane.b32.xlu1 %v9687_v27, %s9784_s16 }
 0x94d   :  { %8687 = vmatmul.mubr.f32.vlgmr.msra.gmra.mrb[4].mxu0 %v2225_v46 }
 0x94e   :  { %9259 = vmatpush3.bf16.msra.mxu0 %v9910_v37  ;;  %8693 = vmatprep.mubr.msk.f32.mxu0 %vm9786_vm1, %v9787_v25 }
 0x94f   :  { %9260 = vmatprep.subr.bf16.mxu0 %v9785_v23  ;;  %3131 = vperm.xlu1 %9641, %v9866_v1  }
 0x955   :  { %8694 = vmatmul.mubr.f32.vlgmr.msra.gmra.mrb[4].mxu0 %v2226_v48 }
 0x956   :  { %9262 = vmatpush3.bf16.msra.mxu0 %v9898_v24  ;;  %8700 = vmatprep.mubr.msk.f32.mxu0 %vm9786_vm1, %v9787_v25 }
 0x957   :  { %9263 = vmatprep.subr.bf16.mxu0 %v9785_v23 }
 0x95d   :  { %8701 = vmatmul.mubr.f32.vlgmr.msra.gmra.mrb[4].mxu0 %v2227_v52 }
 0x95e   :  { %9265 = vmatpush3.bf16.msra.mxu0 %v9912_v38  ;;  %8707 = vmatprep.mubr.msk.f32.mxu0 %vm9786_vm1, %v9787_v25 }
 0x95f   :  { %9266 = vmatprep.subr.bf16.mxu0 %v9785_v23 }
 0x965   :  { %8708 = vmatmul.mubr.f32.vlgmr.msra.gmra.mrb[4].mxu0 %v2225_v46 }
 0x966   :  { %9268 = vmatpush3.bf16.msra.mxu0 %v9898_v24  ;;  %8714 = vmatprep.mubr.msk.f32.mxu0 %vm9786_vm1, %v9787_v25 }
 0x967   :  { %9287 = vmatprep.subr.bf16.mxu0 %v9785_v23 }
 0x96d   :  { %8715 = vmatmul.mubr.f32.vlgmr.msra.gmra.mrb[4].mxu0 %v2225_v46 }
 0x96e   :  { %9289 = vmatpush3.bf16.msra.mxu0 %v9898_v24  ;;  %8763 = vmatprep.mubr.msk.f32.mxu0 %vm9786_vm1, %v9787_v25 }
 0x96f   :  { %9290 = vmatprep.subr.bf16.mxu0 %v9785_v23 }
 0x9bd   :  { %v1630_v59 = vpop.permute.xlu1 %1629 }
 0x9be   :  { %v1632_v60 = vmul.f32 %v9685_v40, %v1630_v59 }
 0x9c0   :  { %1634 = vrot.lane.b32.xlu0 %v1632_v60, %s9788_s4 }
 0x9ce   :  { %v10122_v13 = vpop.permute.xlu1 %3131 }
 0x9cf   :  { %v3134_v14 = vmul.f32 %v9872_v2, %v10122_v13 }
 0xa32   :  { %v1635_v62 = vpop.permute.xlu0 %1634 }
 0xa33   :  { %v1636_v63 = vsel %vm124_vm2, %v1635_v62, 0 }
 0xa34   :  { %v1705_v0 = vand.u32 4294901760, %v1636_v63 }
 0xa36   :  { %v1706_v6 = vsub.f32 %v1636_v63, %v1705_v0 }
 0xa38   :  { %v1707_v9 = vand.u32 4294901760, %v1706_v6 }
 0xa3a   :  { %v1708_v4 = vsub.f32 %v1706_v6, %v1707_v9 }
 0xa3c   :  { %v1709_v10 = vand.u32 4294901760, %v1708_v4  ;;  %v9793_v4 = vmov 4  }
 0xa3d   :  { %9642 = vset.pattern.permute.xlu1 %v9793_v4 }
 0xa3e   :  { %8638 = vmatmul.mubr.f32.vlgmr.msra.gmra.mrb[2].mxu1 %v1709_v10 }
 0xa3f   :  { %9238 = vmatpush3.bf16.msra.mxu1 %v10011_v53  ;;  %8644 = vmatprep.mubr.msk.f32.mxu1 %vm9786_vm1, %v9787_v25 }
 0xa40   :  { %v2613_v11 = vpop.f32.mrb[4].mxu0  ;;  %9239 = vmatprep.subr.bf16.mxu1 %v9785_v23 }
 0xa41   :  { %v8716_v12 = vpop.f32.mrb[5].mxu0  ;;  %3136 = vrot.lane.b32.xlu0 %v2613_v11, %s9790_s21  ;;  %v2618_v49 = vadd.f32 %v2617_v29, %v2613_v11 }
 0xa46   :  { %8645 = vmatmul.mubr.f32.vlgmr.msra.gmra.mrb[2].mxu1 %v1705_v0 }
 0xa47   :  { %9241 = vmatpush3.bf16.msra.mxu1 %v10013_v54  ;;  %8651 = vmatprep.mubr.msk.f32.mxu1 %vm9786_vm1, %v9787_v25 }
 0xa48   :  { %9242 = vmatprep.subr.bf16.mxu1 %v9785_v23 }
 0xa4e   :  { %8652 = vmatmul.mubr.f32.vlgmr.msra.gmra.mrb[2].mxu1 %v1706_v6 }
 0xa4f   :  { %9244 = vmatpush3.bf16.msra.mxu1 %v10006_v41  ;;  %8658 = vmatprep.mubr.msk.f32.mxu1 %vm9786_vm1, %v9787_v25 }
 0xa50   :  { %9245 = vmatprep.subr.bf16.mxu1 %v9785_v23 }
 0xa56   :  { %8659 = vmatmul.mubr.f32.vlgmr.msra.gmra.mrb[2].mxu1 %v1707_v9 }
 0xa57   :  { %9247 = vmatpush3.bf16.msra.mxu1 %v10015_v55  ;;  %8665 = vmatprep.mubr.msk.f32.mxu1 %vm9786_vm1, %v9787_v25 }
 0xa58   :  { %9248 = vmatprep.subr.bf16.mxu1 %v9785_v23 }
 0xa5e   :  { %8666 = vmatmul.mubr.f32.vlgmr.msra.gmra.mrb[2].mxu1 %v1705_v0 }
 0xa5f   :  { %9250 = vmatpush3.bf16.msra.mxu1 %v10006_v41  ;;  %8672 = vmatprep.mubr.msk.f32.mxu1 %vm9786_vm1, %v9787_v25 }
 0xa60   :  { %9269 = vmatprep.subr.bf16.mxu1 %v9785_v23 }
 0xa66   :  { %8673 = vmatmul.mubr.f32.vlgmr.msra.gmra.mrb[2].mxu1 %v1705_v0 }
 0xa67   :  { %9271 = vmatpush3.bf16.msra.mxu1 %v10006_v41  ;;  %8721 = vmatprep.mubr.msk.f32.mxu1 %vm9786_vm1, %v9787_v25 }
 0xa68   :  { %9272 = vmatprep.subr.bf16.mxu1 %v9785_v23 }
 0xab3   :  { %v3137_v15 = vpop.permute.xlu0 %3136 }
 0xab4   :  { %v3139_v16 = vadd.f32 %v3137_v15, %v3134_v14 }
 0xab6   :  { %v3140_v17 = vadd.f32 %v9877_v3, %v3139_v16 }
 0xab8   :  { %9688 = vtanh.f32 %v3140_v17  ;;  %v8209_v19 = vmul.f32 -1.442695, %v3140_v17 }
 0xaba   :  { %9690 = vpow2.f32 %v8209_v19 }
 0xac2   :  { %v9689_v18 = vpop.eup %9688 }
 0xac3   :  { %3150 = vrot.lane.b32.xlu1 %v9689_v18, %s9783_s15 }
 0xac4   :  { %v9691_v20 = vpop.eup %9690 }
 0xac5   :  { %v3144_v22 = vadd.f32 1.0, %v9691_v20 }
 0xac7   :  { %9692 = vrcp.f32 %v3144_v22 }
 0xad1   :  { %v9693_v26 = vpop.eup %9692 }
 0xad2   :  { %v3148_v40 = vmul.f32 %v9693_v26, %v10056_v30 }
 0xb35   :  { %v3151_v28 = vpop.permute.xlu1 %3150 }
 0xb36   :  { %v3153_v31 = vmul.f32 %v9693_v26, %v3151_v28 }
 0xb38   :  { %3155 = vrot.lane.b32.xlu0 %v3153_v31, %s9784_s16  ;;  %v3629_v31 = vmul.f32 %v9951_v61, %v10122_v13 }
 0xb39   :  { %v10131_v32 = vpop.f32.mrb[2].mxu1 }
 0xb3a   :  { %v2619_v33 = vadd.f32 %v2618_v49, %v10131_v32  ;;  %v8674_v34 = vpop.f32.mrb[3].mxu1 }
 0xb3c   :  { %v2620_v35 = vadd.f32 %v9959_v5, %v2619_v33 }
 0xb3e   :  { %9694 = vtanh.f32 %v2620_v35  ;;  %v8208_v39 = vmul.f32 -1.442695, %v2620_v35 }
 0xb40   :  { %9696 = vpow2.f32 %v8208_v39 }
 0xb48   :  { %v9695_v7 = vpop.eup %9694 }
 0xb49   :  { %2630 = vrot.lane.b32.xlu0 %v9695_v7, %s9783_s15 }
 0xb4a   :  { %v9697_v8 = vpop.eup %9696 }
 0xb4b   :  { %v2624_v44 = vadd.f32 1.0, %v9697_v8 }
 0xbaa   :  { %v3156_v42 = vpop.permute.xlu0 %3155 }
 0xbab   :  { %v10137_v43 = vadd.f32 %v3156_v42, %v3148_v40 }
 0xbad   :  { %9698 = vtanh.f32 %v10137_v43 }
 0xbae   :  { %9700 = vrcp.f32 %v2624_v44 }
 0xbb7   :  { %v9699_v45 = vpop.eup %9698 }
 0xbb8   :  { %3161 = vrot.lane.b32.xlu1 %v9699_v45, %s9784_s16  ;;  %v9701_v46 = vpop.eup %9700 }
 0xbb9   :  { %v2628_v30 = vmul.f32 %v9701_v46, %v10066_v51 }
 0xbbb   :  { %v2631_v47 = vpop.permute.xlu0 %2630 }
 0xbbc   :  { %v2633_v48 = vmul.f32 %v9701_v46, %v2631_v47 }
 0xbbe   :  { %2635 = vrot.lane.b32.xlu0 %v2633_v48, %s9784_s16 }
 0xc2a   :  { %v3162_v50 = vpop.permute.xlu1 %3161 }
 0xc2b   :  { %v3164_v52 = vmul.f32 %v9693_v26, %v3162_v50 }
 0xc2d   :  { %3166 = vrot.lane.b32.xlu1 %v3164_v52, %s9788_s4 }
 0xc30   :  { %v2636_v56 = vpop.permute.xlu0 %2635 }
 0xc31   :  { %v10144_v57 = vadd.f32 %v2636_v56, %v2628_v30 }
 0xc33   :  { %9702 = vtanh.f32 %v10144_v57 }
 0xc3d   :  { %v9703_v58 = vpop.eup %9702 }
 0xc3e   :  { %2641 = vrot.lane.b32.xlu1 %v9703_v58, %s9784_s16 }
 0xc42   :  { %4143 = vperm.xlu1 %9642, %v9866_v1  }
 0xc9f   :  { %v3167_v27 = vpop.permute.xlu1 %3166 }
 0xca0   :  { %v3168_v59 = vsel %vm124_vm2, %v3167_v27, 0 }
 0xca1   :  { %v3237_v60 = vand.u32 4294901760, %v3168_v59 }
 0xca3   :  { %v3238_v62 = vsub.f32 %v3168_v59, %v3237_v60 }
 0xca5   :  { %v3239_v63 = vand.u32 4294901760, %v3238_v62 }
 0xca7   :  { %v3240_v0 = vsub.f32 %v3238_v62, %v3239_v63 }
 0xca9   :  { %v3241_v6 = vand.u32 4294901760, %v3240_v0 }
 0xcab   :  { %8764 = vmatmul.mubr.f32.vlgmr.msra.gmra.mrb[6].mxu0 %v3241_v6 }
 0xcac   :  { %9292 = vmatpush3.bf16.msra.mxu0 %v9908_v36  ;;  %8770 = vmatprep.mubr.msk.f32.mxu0 %vm9786_vm1, %v9787_v25 }
 0xcad   :  { %9293 = vmatprep.subr.bf16.mxu0 %v9785_v23 }
 0xcb0   :  { %v2642_v51 = vpop.permute.xlu1 %2641 }
 0xcb1   :  { %v2644_v9 = vmul.f32 %v9701_v46, %v2642_v51 }
 0xcb3   :  { %8771 = vmatmul.mubr.f32.vlgmr.msra.gmra.mrb[6].mxu0 %v3237_v60  ;;  %2646 = vrot.lane.b32.xlu0 %v2644_v9, %s9788_s4 }
 0xcb4   :  { %9295 = vmatpush3.bf16.msra.mxu0 %v9910_v37  ;;  %8777 = vmatprep.mubr.msk.f32.mxu0 %vm9786_vm1, %v9787_v25 }
 0xcb5   :  { %9296 = vmatprep.subr.bf16.mxu0 %v9785_v23 }
 0xcbb   :  { %8778 = vmatmul.mubr.f32.vlgmr.msra.gmra.mrb[6].mxu0 %v3238_v62 }
 0xcbc   :  { %9298 = vmatpush3.bf16.msra.mxu0 %v9898_v24  ;;  %8784 = vmatprep.mubr.msk.f32.mxu0 %vm9786_vm1, %v9787_v25 }
 0xcbd   :  { %9299 = vmatprep.subr.bf16.mxu0 %v9785_v23 }
 0xcc1   :  { %v10201_v19 = vpop.permute.xlu1 %4143 }
 0xcc2   :  { %v4146_v20 = vmul.f32 %v9872_v2, %v10201_v19 }
 0xcc3   :  { %8785 = vmatmul.mubr.f32.vlgmr.msra.gmra.mrb[6].mxu0 %v3239_v63 }
 0xcc4   :  { %9301 = vmatpush3.bf16.msra.mxu0 %v9912_v38  ;;  %8791 = vmatprep.mubr.msk.f32.mxu0 %vm9786_vm1, %v9787_v25 }
 0xcc5   :  { %9302 = vmatprep.subr.bf16.mxu0 %v9785_v23 }
 0xccb   :  { %8792 = vmatmul.mubr.f32.vlgmr.msra.gmra.mrb[6].mxu0 %v3237_v60 }
 0xccc   :  { %9304 = vmatpush3.bf16.msra.mxu0 %v9898_v24  ;;  %8798 = vmatprep.mubr.msk.f32.mxu0 %vm9786_vm1, %v9787_v25 }
 0xccd   :  { %9323 = vmatprep.subr.bf16.mxu0 %v9785_v23 }
 0xcd3   :  { %8799 = vmatmul.mubr.f32.vlgmr.msra.gmra.mrb[6].mxu0 %v3237_v60 }
 0xcd4   :  { %9325 = vmatpush3.bf16.msra.mxu0 %v9898_v24  ;;  %8847 = vmatprep.mubr.msk.f32.mxu0 %vm9786_vm1, %v9787_v25 }
 0xcd5   :  { %9326 = vmatprep.subr.bf16.mxu0 %v9785_v23 }
 0xd25   :  { %v2647_v10 = vpop.permute.xlu0 %2646 }
 0xd26   :  { %v2648_v11 = vsel %vm124_vm2, %v2647_v10, 0 }
 0xd27   :  { %v2717_v12 = vand.u32 4294901760, %v2648_v11 }
 0xd29   :  { %v2718_v14 = vsub.f32 %v2648_v11, %v2717_v12 }
 0xd2b   :  { %v2719_v15 = vand.u32 4294901760, %v2718_v14 }
 0xd2d   :  { %v2720_v16 = vsub.f32 %v2718_v14, %v2719_v15 }
 0xd2f   :  { %v2721_v17 = vand.u32 4294901760, %v2720_v16 }
 0xd31   :  { %8722 = vmatmul.mubr.f32.vlgmr.msra.gmra.mrb[4].mxu1 %v2721_v17 }
 0xd32   :  { %9274 = vmatpush3.bf16.msra.mxu1 %v10011_v53  ;;  %8728 = vmatprep.mubr.msk.f32.mxu1 %vm9786_vm1, %v9787_v25 }
 0xd33   :  { %9275 = vmatprep.subr.bf16.mxu1 %v9785_v23 }
 0xd39   :  { %8729 = vmatmul.mubr.f32.vlgmr.msra.gmra.mrb[4].mxu1 %v2717_v12 }
 0xd3a   :  { %9277 = vmatpush3.bf16.msra.mxu1 %v10013_v54  ;;  %8735 = vmatprep.mubr.msk.f32.mxu1 %vm9786_vm1, %v9787_v25 }
 0xd3b   :  { %9278 = vmatprep.subr.bf16.mxu1 %v9785_v23 }
 0xd41   :  { %8736 = vmatmul.mubr.f32.vlgmr.msra.gmra.mrb[4].mxu1 %v2718_v14  ;;  %v9794_v14 = vmov 5  }
 0xd42   :  { %9280 = vmatpush3.bf16.msra.mxu1 %v10006_v41  ;;  %8742 = vmatprep.mubr.msk.f32.mxu1 %vm9786_vm1, %v9787_v25 }
 0xd43   :  { %9281 = vmatprep.subr.bf16.mxu1 %v9785_v23  ;;  %9643 = vset.pattern.permute.xlu1 %v9794_v14 }
 0xd49   :  { %8743 = vmatmul.mubr.f32.vlgmr.msra.gmra.mrb[4].mxu1 %v2719_v15  ;;  %v10252_v15 = vld [vmem:[%s10590_s0] sm:$0xff] }
 0xd4a   :  { %9283 = vmatpush3.bf16.msra.mxu1 %v10015_v55  ;;  %8749 = vmatprep.mubr.msk.f32.mxu1 %vm9786_vm1, %v9787_v25 }
 0xd4b   :  { %9284 = vmatprep.subr.bf16.mxu1 %v9785_v23 }
 0xd51   :  { %8750 = vmatmul.mubr.f32.vlgmr.msra.gmra.mrb[4].mxu1 %v2717_v12 }
 0xd52   :  { %9286 = vmatpush3.bf16.msra.mxu1 %v10006_v41  ;;  %8756 = vmatprep.mubr.msk.f32.mxu1 %vm9786_vm1, %v9787_v25 }
 0xd53   :  { %9305 = vmatprep.subr.bf16.mxu1 %v9785_v23 }
 0xd59   :  { %8757 = vmatmul.mubr.f32.vlgmr.msra.gmra.mrb[4].mxu1 %v2717_v12 }
 0xd5a   :  { %9307 = vmatpush3.bf16.msra.mxu1 %v10006_v41  ;;  %8805 = vmatprep.mubr.msk.f32.mxu1 %vm9786_vm1, %v9787_v25 }
 0xd5b   :  { %9308 = vmatprep.subr.bf16.mxu1 %v9785_v23 }
 0xda6   :  { %v3625_v1 = vpop.f32.mrb[6].mxu0 }
 0xda7   :  { %v8800_v18 = vpop.f32.mrb[7].mxu0  ;;  %4148 = vrot.lane.b32.xlu0 %v3625_v1, %s9790_s21  ;;  %v3630_v49 = vadd.f32 %v3629_v31, %v3625_v1 }
 0xe19   :  { %v4149_v22 = vpop.permute.xlu0 %4148 }
 0xe1a   :  { %v4151_v26 = vadd.f32 %v4149_v22, %v4146_v20 }
 0xe1c   :  { %v4152_v28 = vadd.f32 %v9877_v3, %v4151_v26 }
 0xe1e   :  { %9704 = vtanh.f32 %v4152_v28  ;;  %v8211_v7 = vmul.f32 -1.442695, %v4152_v28 }
 0xe20   :  { %9706 = vpow2.f32 %v8211_v7 }
 0xe28   :  { %v9705_v29 = vpop.eup %9704 }
 0xe29   :  { %4162 = vrot.lane.b32.xlu1 %v9705_v29, %s9783_s15 }
 0xe2a   :  { %v9707_v2 = vpop.eup %9706 }
 0xe2b   :  { %v4156_v39 = vadd.f32 1.0, %v9707_v2  ;;  %v4641_v2 = vmul.f32 %v9951_v61, %v10201_v19 }
 0xe2c   :  { %v10209_v33 = vpop.f32.mrb[4].mxu1 }
 0xe2d   :  { %v3631_v34 = vadd.f32 %v3630_v49, %v10209_v33  ;;  %v8758_v35 = vpop.f32.mrb[5].mxu1  ;;  %9708 = vrcp.f32 %v4156_v39  ;;  %v10290_v49 = vld [vmem:[%s10591_s1] ss:$0 sm:$0xff] }
 0xe2e   :  { %v10299_v39 = vld [vmem:[%s10592_s6] ss:$0 sm:$0xff] }
 0xe2f   :  { %v3632_v3 = vadd.f32 %v9959_v5, %v3631_v34 }
 0xe31   :  { %9710 = vtanh.f32 %v3632_v3  ;;  %v8210_v44 = vmul.f32 -1.442695, %v3632_v3 }
 0xe33   :  { %9712 = vpow2.f32 %v8210_v44 }
 0xe37   :  { %v9709_v40 = vpop.eup %9708 }
 0xe38   :  { %v4160_v47 = vmul.f32 %v9709_v40, %v10137_v43 }
 0xe3b   :  { %v9711_v13 = vpop.eup %9710 }
 0xe3d   :  { %v9713_v45 = vpop.eup %9712 }
 0xe3e   :  { %v3636_v46 = vadd.f32 1.0, %v9713_v45 }
 0xe40   :  { %9714 = vrcp.f32 %v3636_v46 }
 0xe4a   :  { %v9715_v52 = vpop.eup %9714 }
 0xe4b   :  { %v3640_v27 = vmul.f32 %v9715_v52, %v10144_v57 }
 0xe9b   :  { %v4163_v8 = vpop.permute.xlu1 %4162 }
 0xe9c   :  { %v4165_v42 = vmul.f32 %v9709_v40, %v4163_v8 }
 0xe9e   :  { %4167 = vrot.lane.b32.xlu0 %v4165_v42, %s9784_s16 }
 0xea2   :  { %3642 = vrot.lane.b32.xlu0 %v9711_v13, %s9783_s15 }
 0xf10   :  { %v4168_v48 = vpop.permute.xlu0 %4167 }
 0xf11   :  { %v10216_v50 = vadd.f32 %v4168_v48, %v4160_v47 }
 0xf13   :  { %9716 = vtanh.f32 %v10216_v50 }
 0xf14   :  { %v3643_v30 = vpop.permute.xlu0 %3642 }
 0xf15   :  { %v3645_v56 = vmul.f32 %v9715_v52, %v3643_v30 }
 0xf17   :  { %3647 = vrot.lane.b32.xlu0 %v3645_v56, %s9784_s16 }
 0xf1d   :  { %v9717_v58 = vpop.eup %9716 }
 0xf1e   :  { %4173 = vrot.lane.b32.xlu1 %v9717_v58, %s9784_s16 }
 0xf89   :  { %v3648_v59 = vpop.permute.xlu0 %3647 }
 0xf8a   :  { %v10222_v60 = vadd.f32 %v3648_v59, %v3640_v27 }
 0xf8c   :  { %9718 = vtanh.f32 %v10222_v60 }
 0xf90   :  { %v4174_v43 = vpop.permute.xlu1 %4173 }
 0xf91   :  { %v4176_v62 = vmul.f32 %v9709_v40, %v4174_v43 }
 0xf93   :  { %4178 = vrot.lane.b32.xlu1 %v4176_v62, %s9788_s4 }
 0xf96   :  { %v9719_v63 = vpop.eup %9718 }
 0xf97   :  { %3653 = vrot.lane.b32.xlu1 %v9719_v63, %s9784_s16 }
 0xf9b   :  { %5155 = vperm.xlu1 %9643, %v10252_v15  }
0x1005   :  { %v4179_v0 = vpop.permute.xlu1 %4178 }
0x1006   :  { %v4180_v6 = vsel %vm124_vm2, %v4179_v0, 0 }
0x1007   :  { %v4249_v51 = vand.u32 4294901760, %v4180_v6 }
0x1009   :  { %v4250_v9 = vsub.f32 %v4180_v6, %v4249_v51  ;;  %v3654_v4 = vpop.permute.xlu1 %3653 }
0x100a   :  { %v3656_v10 = vmul.f32 %v9715_v52, %v3654_v4 }
0x100b   :  { %v4251_v57 = vand.u32 4294901760, %v4250_v9 }
0x100c   :  { %3658 = vrot.lane.b32.xlu0 %v3656_v10, %s9788_s4 }
0x100d   :  { %v4252_v11 = vsub.f32 %v4250_v9, %v4251_v57 }
0x100f   :  { %v4253_v12 = vand.u32 4294901760, %v4252_v11 }
0x1011   :  { %8848 = vmatmul.mubr.f32.vlgmr.msra.gmra.mrb[8].mxu0 %v4253_v12 }
0x1012   :  { %9328 = vmatpush3.bf16.msra.mxu0 %v9908_v36  ;;  %8854 = vmatprep.mubr.msk.f32.mxu0 %vm9786_vm1, %v9787_v25 }
0x1013   :  { %9329 = vmatprep.subr.bf16.mxu0 %v9785_v23 }
0x1019   :  { %8855 = vmatmul.mubr.f32.vlgmr.msra.gmra.mrb[8].mxu0 %v4249_v51 }
0x101a   :  { %9331 = vmatpush3.bf16.msra.mxu0 %v9910_v37  ;;  %8861 = vmatprep.mubr.msk.f32.mxu0 %vm9786_vm1, %v9787_v25  ;;  %v10285_v31 = vpop.permute.xlu1 %5155 }
0x101b   :  { %9332 = vmatprep.subr.bf16.mxu0 %v9785_v23  ;;  %v5158_v34 = vmul.f32 %v10290_v49, %v10285_v31 }
0x1021   :  { %8862 = vmatmul.mubr.f32.vlgmr.msra.gmra.mrb[8].mxu0 %v4250_v9 }
0x1022   :  { %9334 = vmatpush3.bf16.msra.mxu0 %v9898_v24  ;;  %8868 = vmatprep.mubr.msk.f32.mxu0 %vm9786_vm1, %v9787_v25 }
0x1023   :  { %9335 = vmatprep.subr.bf16.mxu0 %v9785_v23 }
0x1029   :  { %8869 = vmatmul.mubr.f32.vlgmr.msra.gmra.mrb[8].mxu0 %v4251_v57 }
0x102a   :  { %9337 = vmatpush3.bf16.msra.mxu0 %v9912_v38  ;;  %8875 = vmatprep.mubr.msk.f32.mxu0 %vm9786_vm1, %v9787_v25 }
0x102b   :  { %9338 = vmatprep.subr.bf16.mxu0 %v9785_v23 }
0x1031   :  { %8876 = vmatmul.mubr.f32.vlgmr.msra.gmra.mrb[8].mxu0 %v4249_v51 }
0x1032   :  { %9340 = vmatpush3.bf16.msra.mxu0 %v9898_v24  ;;  %8882 = vmatprep.mubr.msk.f32.mxu0 %vm9786_vm1, %v9787_v25 }
0x1033   :  { %9359 = vmatprep.subr.bf16.mxu0 %v9785_v23 }
0x1039   :  { %8883 = vmatmul.mubr.f32.vlgmr.msra.gmra.mrb[8].mxu0 %v4249_v51 }
0x103a   :  { %9361 = vmatpush3.bf16.msra.mxu0 %v9898_v24  ;;  %8931 = vmatprep.mubr.msk.f32.mxu0 %vm9786_vm1, %v9787_v25 }
0x103b   :  { %9362 = vmatprep.subr.bf16.mxu0 %v9785_v23 }
0x107e   :  { %v3659_v16 = vpop.permute.xlu0 %3658 }
0x107f   :  { %v3660_v17 = vsel %vm124_vm2, %v3659_v16, 0 }
0x1080   :  { %v3729_v1 = vand.u32 4294901760, %v3660_v17 }
0x1082   :  { %v3730_v18 = vsub.f32 %v3660_v17, %v3729_v1 }
0x1084   :  { %v3731_v20 = vand.u32 4294901760, %v3730_v18 }
0x1086   :  { %v3732_v22 = vsub.f32 %v3730_v18, %v3731_v20 }
0x1088   :  { %v3733_v26 = vand.u32 4294901760, %v3732_v22 }
0x108a   :  { %8806 = vmatmul.mubr.f32.vlgmr.msra.gmra.mrb[6].mxu1 %v3733_v26 }
0x108b   :  { %9310 = vmatpush3.bf16.msra.mxu1 %v10011_v53  ;;  %8812 = vmatprep.mubr.msk.f32.mxu1 %vm9786_vm1, %v9787_v25 }
0x108c   :  { %9311 = vmatprep.subr.bf16.mxu1 %v9785_v23 }
0x1092   :  { %8813 = vmatmul.mubr.f32.vlgmr.msra.gmra.mrb[6].mxu1 %v3729_v1 }
0x1093   :  { %9313 = vmatpush3.bf16.msra.mxu1 %v10013_v54  ;;  %8819 = vmatprep.mubr.msk.f32.mxu1 %vm9786_vm1, %v9787_v25 }
0x1094   :  { %9314 = vmatprep.subr.bf16.mxu1 %v9785_v23 }
0x109a   :  { %8820 = vmatmul.mubr.f32.vlgmr.msra.gmra.mrb[6].mxu1 %v3730_v18 }
0x109b   :  { %9316 = vmatpush3.bf16.msra.mxu1 %v10006_v41  ;;  %8826 = vmatprep.mubr.msk.f32.mxu1 %vm9786_vm1, %v9787_v25 }
0x109c   :  { %9317 = vmatprep.subr.bf16.mxu1 %v9785_v23 }
0x10a2   :  { %8827 = vmatmul.mubr.f32.vlgmr.msra.gmra.mrb[6].mxu1 %v3731_v20 }
0x10a3   :  { %9319 = vmatpush3.bf16.msra.mxu1 %v10015_v55  ;;  %8833 = vmatprep.mubr.msk.f32.mxu1 %vm9786_vm1, %v9787_v25 }
0x10a4   :  { %9320 = vmatprep.subr.bf16.mxu1 %v9785_v23 }
0x10aa   :  { %8834 = vmatmul.mubr.f32.vlgmr.msra.gmra.mrb[6].mxu1 %v3729_v1 }
0x10ab   :  { %9322 = vmatpush3.bf16.msra.mxu1 %v10006_v41  ;;  %8840 = vmatprep.mubr.msk.f32.mxu1 %vm9786_vm1, %v9787_v25 }
0x10ac   :  { %9341 = vmatprep.subr.bf16.mxu1 %v9785_v23 }
0x10b2   :  { %8841 = vmatmul.mubr.f32.vlgmr.msra.gmra.mrb[6].mxu1 %v3729_v1 }
0x10b3   :  { %9343 = vmatpush3.bf16.msra.mxu1 %v10006_v41  ;;  %8889 = vmatprep.mubr.msk.f32.mxu1 %vm9786_vm1, %v9787_v25 }
0x10b4   :  { %9344 = vmatprep.subr.bf16.mxu1 %v9785_v23 }
0x110c   :  { %v4637_v28 = vpop.f32.mrb[8].mxu0 }
0x110d   :  { %v8884_v29 = vpop.f32.mrb[9].mxu0  ;;  %5160 = vrot.lane.b32.xlu0 %v4637_v28, %s9790_s21  ;;  %v4642_v40 = vadd.f32 %v4641_v2, %v4637_v28 }
0x117f   :  { %v5161_v35 = vpop.permute.xlu0 %5160 }
0x1180   :  { %v5163_v7 = vadd.f32 %v5161_v35, %v5158_v34 }
0x1182   :  { %v5164_v3 = vadd.f32 %v10299_v39, %v5163_v7 }
0x1184   :  { %9720 = vtanh.f32 %v5164_v3  ;;  %v8213_v19 = vmul.f32 -1.442695, %v5164_v3 }
0x1185   :  { %v10302_v8 = vpop.f32.mrb[6].mxu1 }
0x1186   :  { %v4643_v42 = vadd.f32 %v4642_v40, %v10302_v8  ;;  %v8842_v13 = vpop.f32.mrb[7].mxu1 }
0x1188   :  { %v4644_v44 = vadd.f32 %v9959_v5, %v4643_v42  ;;  %v10377_v42 = vld [vmem:[%s10594_s2] ss:$0 sm:$0xff] }
0x1189   :  { %v5653_v13 = vmul.f32 %v10377_v42, %v10285_v31 }
0x118a   :  { %9722 = vtanh.f32 %v4644_v44  ;;  %v8212_v46 = vmul.f32 -1.442695, %v4644_v44 }
0x118b   :  { %9724 = vpow2.f32 %v8213_v19 }
0x118c   :  { %9726 = vpow2.f32 %v8212_v46  ;;  %v10387_v46 = vld [vmem:[%s10595_s7] ss:$0 sm:$0xff] }
0x118e   :  { %v9721_v45 = vpop.eup %9720 }
0x118f   :  { %5174 = vrot.lane.b32.xlu1 %v9721_v45, %s9783_s15 }
0x1194   :  { %v9723_v61 = vpop.eup %9722 }
0x1195   :  { %4654 = vrot.lane.b32.xlu1 %v9723_v61, %s9783_s15  ;;  %v9725_v47 = vpop.eup %9724 }
0x1196   :  { %v5168_v48 = vadd.f32 1.0, %v9725_v47  ;;  %v9727_v52 = vpop.eup %9726 }
0x1197   :  { %v4648_v30 = vadd.f32 1.0, %v9727_v52 }
0x1198   :  { %9728 = vrcp.f32 %v5168_v48 }
0x1199   :  { %9730 = vrcp.f32 %v4648_v30 }
0x11a2   :  { %v9729_v56 = vpop.eup %9728 }
0x11a3   :  { %v9731_v27 = vpop.eup %9730  ;;  %v5172_v62 = vmul.f32 %v9729_v56, %v10216_v50 }
0x11a4   :  { %v4652_v6 = vmul.f32 %v9731_v27, %v10222_v60  ;;  %v9795_v60 = vmov 6  }
0x11a5   :  { %9644 = vset.pattern.permute.xlu1 %v9795_v60 }
0x1201   :  { %v5175_v58 = vpop.permute.xlu1 %5174 }
0x1202   :  { %v5177_v5 = vmul.f32 %v9729_v56, %v5175_v58 }
0x1204   :  { %5179 = vrot.lane.b32.xlu0 %v5177_v5, %s9784_s16 }
0x1207   :  { %v4655_v59 = vpop.permute.xlu1 %4654 }
0x1208   :  { %v4657_v43 = vmul.f32 %v9731_v27, %v4655_v59 }
0x120a   :  { %4659 = vrot.lane.b32.xlu1 %v4657_v43, %s9784_s16 }
0x1276   :  { %v5180_v63 = vpop.permute.xlu0 %5179 }
0x1277   :  { %v10311_v0 = vadd.f32 %v5180_v63, %v5172_v62 }
0x1279   :  { %9732 = vtanh.f32 %v10311_v0 }
0x127c   :  { %v4660_v51 = vpop.permute.xlu1 %4659 }
0x127d   :  { %v10315_v9 = vadd.f32 %v4660_v51, %v4652_v6 }
0x127f   :  { %9734 = vtanh.f32 %v10315_v9 }
0x1283   :  { %v9733_v4 = vpop.eup %9732 }
0x1284   :  { %5185 = vrot.lane.b32.xlu0 %v9733_v4, %s9784_s16 }
0x1289   :  { %v9735_v10 = vpop.eup %9734 }
0x128a   :  { %4665 = vrot.lane.b32.xlu1 %v9735_v10, %s9784_s16 }
0x128e   :  { %6167 = vperm.xlu1 %9644, %v10252_v15  }
0x12f6   :  { %v5186_v57 = vpop.permute.xlu0 %5185 }
0x12f7   :  { %v5188_v50 = vmul.f32 %v9729_v56, %v5186_v57 }
0x12f9   :  { %5190 = vrot.lane.b32.xlu0 %v5188_v50, %s9788_s4 }
0x12fc   :  { %v4666_v11 = vpop.permute.xlu1 %4665 }
0x12fd   :  { %v4668_v12 = vmul.f32 %v9731_v27, %v4666_v11 }
0x12ff   :  { %4670 = vrot.lane.b32.xlu0 %v4668_v12, %s9788_s4 }
0x130d   :  { %v10391_v31 = vpop.permute.xlu1 %6167 }
0x130e   :  { %v6170_v30 = vmul.f32 %v10290_v49, %v10391_v31 }
0x136b   :  { %v5191_v14 = vpop.permute.xlu0 %5190 }
0x136c   :  { %v5192_v16 = vsel %vm124_vm2, %v5191_v14, 0 }
0x136d   :  { %v5261_v17 = vand.u32 4294901760, %v5192_v16 }
0x136f   :  { %v5262_v1 = vsub.f32 %v5192_v16, %v5261_v17 }
0x1371   :  { %v5263_v18 = vand.u32 4294901760, %v5262_v1  ;;  %v4671_v20 = vpop.permute.xlu0 %4670 }
0x1372   :  { %v4672_v22 = vsel %vm124_vm2, %v4671_v20, 0 }
0x1373   :  { %v5264_v26 = vsub.f32 %v5262_v1, %v5263_v18  ;;  %v4741_v28 = vand.u32 4294901760, %v4672_v22 }
0x1375   :  { %v5265_v29 = vand.u32 4294901760, %v5264_v26  ;;  %v4742_v34 = vsub.f32 %v4672_v22, %v4741_v28 }
0x1377   :  { %v4743_v35 = vand.u32 4294901760, %v4742_v34  ;;  %8932 = vmatmul.mubr.f32.vlgmr.msra.gmra.mrb[10].mxu0 %v5265_v29 }
0x1378   :  { %9364 = vmatpush3.bf16.msra.mxu0 %v9908_v36  ;;  %8938 = vmatprep.mubr.msk.f32.mxu0 %vm9786_vm1, %v9787_v25 }
0x1379   :  { %v4744_v7 = vsub.f32 %v4742_v34, %v4743_v35  ;;  %9365 = vmatprep.subr.bf16.mxu0 %v9785_v23 }
0x137b   :  { %v4745_v2 = vand.u32 4294901760, %v4744_v7 }
0x137d   :  { %8890 = vmatmul.mubr.f32.vlgmr.msra.gmra.mrb[8].mxu1 %v4745_v2 }
0x137e   :  { %9346 = vmatpush3.bf16.msra.mxu1 %v10011_v53  ;;  %8896 = vmatprep.mubr.msk.f32.mxu1 %vm9786_vm1, %v9787_v25 }
0x137f   :  { %8939 = vmatmul.mubr.f32.vlgmr.msra.gmra.mrb[10].mxu0 %v5261_v17  ;;  %9347 = vmatprep.subr.bf16.mxu1 %v9785_v23 }
0x1380   :  { %9367 = vmatpush3.bf16.msra.mxu0 %v9910_v37  ;;  %8945 = vmatprep.mubr.msk.f32.mxu0 %vm9786_vm1, %v9787_v25 }
0x1381   :  { %9368 = vmatprep.subr.bf16.mxu0 %v9785_v23 }
0x1385   :  { %8897 = vmatmul.mubr.f32.vlgmr.msra.gmra.mrb[8].mxu1 %v4741_v28 }
0x1386   :  { %9349 = vmatpush3.bf16.msra.mxu1 %v10013_v54  ;;  %8903 = vmatprep.mubr.msk.f32.mxu1 %vm9786_vm1, %v9787_v25 }
0x1387   :  { %8946 = vmatmul.mubr.f32.vlgmr.msra.gmra.mrb[10].mxu0 %v5262_v1  ;;  %9350 = vmatprep.subr.bf16.mxu1 %v9785_v23 }
0x1388   :  { %9370 = vmatpush3.bf16.msra.mxu0 %v9898_v24  ;;  %8952 = vmatprep.mubr.msk.f32.mxu0 %vm9786_vm1, %v9787_v25 }
0x1389   :  { %9371 = vmatprep.subr.bf16.mxu0 %v9785_v23 }
0x138d   :  { %8904 = vmatmul.mubr.f32.vlgmr.msra.gmra.mrb[8].mxu1 %v4742_v34 }
0x138e   :  { %9352 = vmatpush3.bf16.msra.mxu1 %v10006_v41  ;;  %8910 = vmatprep.mubr.msk.f32.mxu1 %vm9786_vm1, %v9787_v25 }
0x138f   :  { %8953 = vmatmul.mubr.f32.vlgmr.msra.gmra.mrb[10].mxu0 %v5263_v18  ;;  %9353 = vmatprep.subr.bf16.mxu1 %v9785_v23 }
0x1390   :  { %9373 = vmatpush3.bf16.msra.mxu0 %v9912_v38  ;;  %8959 = vmatprep.mubr.msk.f32.mxu0 %vm9786_vm1, %v9787_v25 }
0x1391   :  { %9374 = vmatprep.subr.bf16.mxu0 %v9785_v23 }
0x1395   :  { %8911 = vmatmul.mubr.f32.vlgmr.msra.gmra.mrb[8].mxu1 %v4743_v35 }
0x1396   :  { %9355 = vmatpush3.bf16.msra.mxu1 %v10015_v55  ;;  %8917 = vmatprep.mubr.msk.f32.mxu1 %vm9786_vm1, %v9787_v25 }
0x1397   :  { %8960 = vmatmul.mubr.f32.vlgmr.msra.gmra.mrb[10].mxu0 %v5261_v17  ;;  %9356 = vmatprep.subr.bf16.mxu1 %v9785_v23 }
0x1398   :  { %9376 = vmatpush3.bf16.msra.mxu0 %v9898_v24  ;;  %8966 = vmatprep.mubr.msk.f32.mxu0 %vm9786_vm1, %v9787_v25 }
0x1399   :  { %9395 = vmatprep.subr.bf16.mxu0 %v9785_v23 }
0x139d   :  { %8918 = vmatmul.mubr.f32.vlgmr.msra.gmra.mrb[8].mxu1 %v4741_v28 }
0x139e   :  { %9358 = vmatpush3.bf16.msra.mxu1 %v10006_v41  ;;  %8924 = vmatprep.mubr.msk.f32.mxu1 %vm9786_vm1, %v9787_v25 }
0x139f   :  { %8967 = vmatmul.mubr.f32.vlgmr.msra.gmra.mrb[10].mxu0 %v5261_v17  ;;  %9377 = vmatprep.subr.bf16.mxu1 %v9785_v23 }
0x13a0   :  { %9397 = vmatpush3.bf16.msra.mxu0 %v9898_v24  ;;  %9015 = vmatprep.mubr.msk.f32.mxu0 %vm9786_vm1, %v9787_v25 }
0x13a1   :  { %9398 = vmatprep.subr.bf16.mxu0 %v9785_v23 }
0x13a5   :  { %8925 = vmatmul.mubr.f32.vlgmr.msra.gmra.mrb[8].mxu1 %v4741_v28 }
0x13a6   :  { %9379 = vmatpush3.bf16.msra.mxu1 %v10006_v41  ;;  %8973 = vmatprep.mubr.msk.f32.mxu1 %vm9786_vm1, %v9787_v25 }
0x13a7   :  { %9380 = vmatprep.subr.bf16.mxu1 %v9785_v23 }
0x1472   :  { %v5649_v3 = vpop.f32.mrb[10].mxu0 }
0x1473   :  { %6172 = vrot.lane.b32.xlu0 %v5649_v3, %s9790_s21  ;;  %v8968_v40 = vpop.f32.mrb[11].mxu0  ;;  %v5654_v44 = vadd.f32 %v5653_v13, %v5649_v3 }
0x1478   :  { %v10381_v45 = vpop.f32.mrb[8].mxu1 }
0x1479   :  { %v5655_v61 = vadd.f32 %v5654_v44, %v10381_v45  ;;  %v8926_v19 = vpop.f32.mrb[9].mxu1 }
0x147b   :  { %v5656_v47 = vadd.f32 %v10387_v46, %v5655_v61 }
0x147d   :  { %9736 = vtanh.f32 %v5656_v47  ;;  %v8214_v52 = vmul.f32 -1.442695, %v5656_v47 }
0x147f   :  { %9738 = vpow2.f32 %v8214_v52  ;;  %v9796_v52 = vmov 7  }
0x1480   :  { %9645 = vset.pattern.permute.xlu1 %v9796_v52 }
0x1487   :  { %v9737_v48 = vpop.eup %9736 }
0x1488   :  { %5666 = vrot.lane.b32.xlu0 %v9737_v48, %s9783_s15 }
0x1489   :  { %v9739_v27 = vpop.eup %9738 }
0x148a   :  { %v5660_v59 = vadd.f32 1.0, %v9739_v27 }
0x14e5   :  { %v6173_v56 = vpop.permute.xlu0 %6172 }
0x14e6   :  { %v6175_v58 = vadd.f32 %v6173_v56, %v6170_v30 }
0x14e8   :  { %v6176_v5 = vadd.f32 %v10299_v39, %v6175_v58  ;;  %v6665_v58 = vmul.f32 %v10377_v42, %v10391_v31 }
0x14ea   :  { %9740 = vtanh.f32 %v6176_v5  ;;  %v8215_v51 = vmul.f32 -1.442695, %v6176_v5 }
0x14eb   :  { %9742 = vrcp.f32 %v5660_v59 }
0x14ec   :  { %9744 = vpow2.f32 %v8215_v51 }
0x14f4   :  { %v9741_v43 = vpop.eup %9740 }
0x14f5   :  { %6186 = vrot.lane.b32.xlu1 %v9741_v43, %s9783_s15  ;;  %v9743_v62 = vpop.eup %9742 }
0x14f6   :  { %v9745_v4 = vpop.eup %9744  ;;  %v5664_v12 = vmul.f32 %v9743_v62, %v10315_v9 }
0x14f7   :  { %v6180_v10 = vadd.f32 1.0, %v9745_v4 }
0x14f9   :  { %9746 = vrcp.f32 %v6180_v10 }
0x14fa   :  { %v5667_v63 = vpop.permute.xlu0 %5666 }
0x14fb   :  { %v5669_v6 = vmul.f32 %v9743_v62, %v5667_v63 }
0x14fd   :  { %5671 = vrot.lane.b32.xlu0 %v5669_v6, %s9784_s16 }
0x1503   :  { %v9747_v57 = vpop.eup %9746 }
0x1504   :  { %v6184_v17 = vmul.f32 %v9747_v57, %v10311_v0 }
0x1567   :  { %v6187_v50 = vpop.permute.xlu1 %6186 }
0x1568   :  { %v6189_v11 = vmul.f32 %v9747_v57, %v6187_v50 }
0x156a   :  { %6191 = vrot.lane.b32.xlu1 %v6189_v11, %s9784_s16 }
0x156f   :  { %v5672_v60 = vpop.permute.xlu0 %5671 }
0x1570   :  { %v10400_v14 = vadd.f32 %v5672_v60, %v5664_v12 }
0x1572   :  { %9748 = vtanh.f32 %v10400_v14 }
0x157c   :  { %v9749_v16 = vpop.eup %9748 }
0x157d   :  { %5677 = vrot.lane.b32.xlu0 %v9749_v16, %s9784_s16 }
0x15dc   :  { %v6192_v1 = vpop.permute.xlu1 %6191 }
0x15dd   :  { %v10405_v18 = vadd.f32 %v6192_v1, %v6184_v17 }
0x15df   :  { %9750 = vtanh.f32 %v10405_v18 }
0x15e9   :  { %v9751_v20 = vpop.eup %9750 }
0x15ea   :  { %6197 = vrot.lane.b32.xlu1 %v9751_v20, %s9784_s16 }
0x15ef   :  { %v5678_v22 = vpop.permute.xlu0 %5677 }
0x15f0   :  { %v5680_v9 = vmul.f32 %v9743_v62, %v5678_v22 }
0x15f2   :  { %5682 = vrot.lane.b32.xlu0 %v5680_v9, %s9788_s4 }
0x165c   :  { %v6198_v26 = vpop.permute.xlu1 %6197 }
0x165d   :  { %v6200_v28 = vmul.f32 %v9747_v57, %v6198_v26 }
0x165f   :  { %6202 = vrot.lane.b32.xlu1 %v6200_v28, %s9788_s4 }
0x1663   :  { %7179 = vperm.xlu1 %9645, %v10252_v15  }
0x1664   :  { %v5683_v29 = vpop.permute.xlu0 %5682 }
0x1665   :  { %v5684_v34 = vsel %vm124_vm2, %v5683_v29, 0 }
0x1666   :  { %v5753_v0 = vand.u32 4294901760, %v5684_v34 }
0x1668   :  { %v5754_v35 = vsub.f32 %v5684_v34, %v5753_v0 }
0x166a   :  { %v5755_v7 = vand.u32 4294901760, %v5754_v35 }
0x166c   :  { %v5756_v2 = vsub.f32 %v5754_v35, %v5755_v7 }
0x166e   :  { %v5757_v3 = vand.u32 4294901760, %v5756_v2 }
0x1670   :  { %8974 = vmatmul.mubr.f32.vlgmr.msra.gmra.mrb[10].mxu1 %v5757_v3 }
0x1671   :  { %9382 = vmatpush3.bf16.msra.mxu1 %v10011_v53  ;;  %8980 = vmatprep.mubr.msk.f32.mxu1 %vm9786_vm1, %v9787_v25 }
0x1672   :  { %9383 = vmatprep.subr.bf16.mxu1 %v9785_v23 }
0x1678   :  { %8981 = vmatmul.mubr.f32.vlgmr.msra.gmra.mrb[10].mxu1 %v5753_v0 }
0x1679   :  { %9385 = vmatpush3.bf16.msra.mxu1 %v10013_v54  ;;  %8987 = vmatprep.mubr.msk.f32.mxu1 %vm9786_vm1, %v9787_v25 }
0x167a   :  { %9386 = vmatprep.subr.bf16.mxu1 %v9785_v23 }
0x1680   :  { %8988 = vmatmul.mubr.f32.vlgmr.msra.gmra.mrb[10].mxu1 %v5754_v35 }
0x1681   :  { %9388 = vmatpush3.bf16.msra.mxu1 %v10006_v41  ;;  %8994 = vmatprep.mubr.msk.f32.mxu1 %vm9786_vm1, %v9787_v25 }
0x1682   :  { %9389 = vmatprep.subr.bf16.mxu1 %v9785_v23 }
0x1688   :  { %8995 = vmatmul.mubr.f32.vlgmr.msra.gmra.mrb[10].mxu1 %v5755_v7 }
0x1689   :  { %9391 = vmatpush3.bf16.msra.mxu1 %v10015_v55  ;;  %9001 = vmatprep.mubr.msk.f32.mxu1 %vm9786_vm1, %v9787_v25 }
0x168a   :  { %9392 = vmatprep.subr.bf16.mxu1 %v9785_v23 }
0x1690   :  { %9002 = vmatmul.mubr.f32.vlgmr.msra.gmra.mrb[10].mxu1 %v5753_v0 }
0x1691   :  { %9394 = vmatpush3.bf16.msra.mxu1 %v10006_v41  ;;  %9008 = vmatprep.mubr.msk.f32.mxu1 %vm9786_vm1, %v9787_v25 }
0x1692   :  { %9413 = vmatprep.subr.bf16.mxu1 %v9785_v23 }
0x1698   :  { %9009 = vmatmul.mubr.f32.vlgmr.msra.gmra.mrb[10].mxu1 %v5753_v0 }
0x1699   :  { %9415 = vmatpush3.bf16.msra.mxu1 %v10006_v41  ;;  %9057 = vmatprep.mubr.msk.f32.mxu1 %vm9786_vm1, %v9787_v25 }
0x169a   :  { %9416 = vmatprep.subr.bf16.mxu1 %v9785_v23 }
0x16d1   :  { %v6203_v40 = vpop.permute.xlu1 %6202 }
0x16d2   :  { %v6204_v13 = vsel %vm124_vm2, %v6203_v40, 0 }
0x16d3   :  { %v6273_v44 = vand.u32 4294901760, %v6204_v13 }
0x16d5   :  { %v6274_v61 = vsub.f32 %v6204_v13, %v6273_v44 }
0x16d7   :  { %v6275_v19 = vand.u32 4294901760, %v6274_v61 }
0x16d9   :  { %v6276_v47 = vsub.f32 %v6274_v61, %v6275_v19 }
0x16db   :  { %v6277_v48 = vand.u32 4294901760, %v6276_v47 }
0x16dd   :  { %9016 = vmatmul.mubr.f32.vlgmr.msra.gmra.mrb[12].mxu0 %v6277_v48 }
0x16de   :  { %9400 = vmatpush3.bf16.msra.mxu0 %v9908_v36  ;;  %9022 = vmatprep.mubr.msk.f32.mxu0 %vm9786_vm1, %v9787_v25 }
0x16df   :  { %9401 = vmatprep.subr.bf16.mxu0 %v9785_v23 }
0x16e2   :  { %v10470_v51 = vpop.permute.xlu1 %7179 }
0x16e3   :  { %v7182_v31 = vmul.f32 %v10290_v49, %v10470_v51 }
0x16e5   :  { %9023 = vmatmul.mubr.f32.vlgmr.msra.gmra.mrb[12].mxu0 %v6273_v44 }
0x16e6   :  { %9403 = vmatpush3.bf16.msra.mxu0 %v9910_v37  ;;  %9029 = vmatprep.mubr.msk.f32.mxu0 %vm9786_vm1, %v9787_v25 }
0x16e7   :  { %9404 = vmatprep.subr.bf16.mxu0 %v9785_v23 }
0x16ed   :  { %9030 = vmatmul.mubr.f32.vlgmr.msra.gmra.mrb[12].mxu0 %v6274_v61 }
0x16ee   :  { %9406 = vmatpush3.bf16.msra.mxu0 %v9898_v24  ;;  %9036 = vmatprep.mubr.msk.f32.mxu0 %vm9786_vm1, %v9787_v25 }
0x16ef   :  { %9407 = vmatprep.subr.bf16.mxu0 %v9785_v23 }
0x16f5   :  { %9037 = vmatmul.mubr.f32.vlgmr.msra.gmra.mrb[12].mxu0 %v6275_v19 }
0x16f6   :  { %9409 = vmatpush3.bf16.msra.mxu0 %v9912_v38  ;;  %9043 = vmatprep.mubr.msk.f32.mxu0 %vm9786_vm1, %v9787_v25 }
0x16f7   :  { %9410 = vmatprep.subr.bf16.mxu0 %v9785_v23 }
0x16fd   :  { %9044 = vmatmul.mubr.f32.vlgmr.msra.gmra.mrb[12].mxu0 %v6273_v44 }
0x16fe   :  { %9412 = vmatpush3.bf16.msra.mxu0 %v9898_v24  ;;  %9050 = vmatprep.mubr.msk.f32.mxu0 %vm9786_vm1, %v9787_v25 }
0x16ff   :  { %9431 = vmatprep.subr.bf16.mxu0 %v9785_v23 }
0x1705   :  { %9051 = vmatmul.mubr.f32.vlgmr.msra.gmra.mrb[12].mxu0 %v6273_v44 }
0x1706   :  { %9433 = vmatpush3.bf16.msra.mxu0 %v9898_v24  ;;  %9099 = vmatprep.mubr.msk.f32.mxu0 %vm9786_vm1, %v9787_v25 }
0x1707   :  { %9437 = vmatprep.subr.bf16.mxu0 %v9785_v23 }
0x176b   :  { %v10462_v30 = vpop.f32.mrb[10].mxu1 }
0x176c   :  { %v9010_v56 = vpop.f32.mrb[11].mxu1 }
0x17d8   :  { %v6661_v5 = vpop.f32.mrb[12].mxu0 }
0x17d9   :  { %v6666_v27 = vadd.f32 %v6665_v58, %v6661_v5  ;;  %v9052_v59 = vpop.f32.mrb[13].mxu0  ;;  %7184 = vrot.lane.b32.xlu0 %v6661_v5, %s9790_s21  ;;  %s9800_s21 = smov 7  }
0x17db   :  { %v6667_v43 = vadd.f32 %v6666_v27, %v10462_v30 }
0x17dd   :  { %v6668_v62 = vadd.f32 %v10387_v46, %v6667_v43 }
0x17df   :  { %9752 = vtanh.f32 %v6668_v62  ;;  %v8216_v6 = vmul.f32 -1.442695, %v6668_v62 }
0x17e1   :  { %9754 = vpow2.f32 %v8216_v6 }
0x17e9   :  { %v9753_v63 = vpop.eup %9752 }
0x17ea   :  { %6678 = vrot.lane.b32.xlu1 %v9753_v63, %s9783_s15 }
0x17eb   :  { %v9755_v4 = vpop.eup %9754 }
0x17ec   :  { %v6672_v50 = vadd.f32 1.0, %v9755_v4 }
0x184b   :  { %v7185_v10 = vpop.permute.xlu0 %7184 }
0x184c   :  { %v7187_v57 = vadd.f32 %v7185_v10, %v7182_v31 }
0x184e   :  { %v7188_v11 = vadd.f32 %v10299_v39, %v7187_v57 }
0x1850   :  { %9756 = vtanh.f32 %v7188_v11  ;;  %v8217_v1 = vmul.f32 -1.442695, %v7188_v11 }
0x1851   :  { %9758 = vrcp.f32 %v6672_v50 }
0x1852   :  { %9760 = vpow2.f32 %v8217_v1 }
0x185a   :  { %v9757_v12 = vpop.eup %9756 }
0x185b   :  { %7198 = vrot.lane.b32.xlu0 %v9757_v12, %s9783_s15  ;;  %v9759_v60 = vpop.eup %9758 }
0x185c   :  { %v6679_v16 = vpop.permute.xlu1 %6678  ;;  %v9761_v20 = vpop.eup %9760  ;;  %v6676_v39 = vmul.f32 %v9759_v60, %v10400_v14 }
0x185d   :  { %v6681_v17 = vmul.f32 %v9759_v60, %v6679_v16  ;;  %v7192_v49 = vadd.f32 1.0, %v9761_v20  ;;  %v7677_v20 = vmul.f32 %v10377_v42, %v10470_v51 }
0x185f   :  { %6683 = vrot.lane.b32.xlu1 %v6681_v17, %s9784_s16  ;;  %9762 = vrcp.f32 %v7192_v49 }
0x1869   :  { %v9763_v22 = vpop.eup %9762 }
0x186a   :  { %v7196_v0 = vmul.f32 %v9763_v22, %v10405_v18 }
0x18cd   :  { %v7199_v9 = vpop.permute.xlu0 %7198 }
0x18ce   :  { %v7201_v26 = vmul.f32 %v9763_v22, %v7199_v9 }
0x18d0   :  { %7203 = vrot.lane.b32.xlu0 %v7201_v26, %s9784_s16 }
0x18d1   :  { %v6684_v28 = vpop.permute.xlu1 %6683 }
0x18d2   :  { %v10479_v29 = vadd.f32 %v6684_v28, %v6676_v39 }
0x18d4   :  { %9764 = vtanh.f32 %v10479_v29 }
0x18de   :  { %v9765_v34 = vpop.eup %9764 }
0x18df   :  { %6689 = vrot.lane.b32.xlu1 %v9765_v34, %s9784_s16 }
0x1942   :  { %v7204_v35 = vpop.permute.xlu0 %7203 }
0x1943   :  { %v7206_v7 = vadd.f32 %v7204_v35, %v7196_v0  ;;  %v14_v35 = vstv %s10597_s3  ;;  %s9797_s3 = smov 1  }
0x1944   :  { %15 = vst [vmem:[#allocation2] sm:$0x1] %v14_v35 }
0x1945   :  { %9766 = vtanh.f32 %v7206_v7 }
0x194f   :  { %v9767_v2 = vpop.eup %9766 }
0x1950   :  { %7209 = vrot.lane.b32.xlu0 %v9767_v2, %s9784_s16 }
0x1951   :  { %v6690_v3 = vpop.permute.xlu1 %6689 }
0x1952   :  { %v6692_v40 = vmul.f32 %v9759_v60, %v6690_v3 }
0x1954   :  { %6694 = vrot.lane.b32.xlu1 %v6692_v40, %s9788_s4 }
0x19c2   :  { %v7210_v14 = vpop.permute.xlu0 %7209 }
0x19c3   :  { %v7212_v13 = vmul.f32 %v9763_v22, %v7210_v14  ;;  %v16_v14 = vstv %s10598_s8  ;;  %s9802_s8 = smov 39  }
0x19c4   :  { %17 = vst [vmem:[#allocation3] sm:$0x1] %v16_v14 }
0x19c5   :  { %7214 = vrot.lane.b32.xlu0 %v7212_v13, %s9788_s4  ;;  %v8198_v13 = vld [vmem:[#allocation2] ss:$0 sm:$0xff] }
0x19c6   :  { %v6695_v44 = vpop.permute.xlu1 %6694 }
0x19c7   :  { %v6696_v61 = vsel %vm124_vm2, %v6695_v44, 0 }
0x19c8   :  { %v6765_v19 = vand.u32 4294901760, %v6696_v61 }
0x19ca   :  { %v6766_v47 = vsub.f32 %v6696_v61, %v6765_v19 }
0x19cc   :  { %v6767_v18 = vand.u32 4294901760, %v6766_v47 }
0x19ce   :  { %v6768_v48 = vsub.f32 %v6766_v47, %v6767_v18 }
0x19d0   :  { %v6769_v52 = vand.u32 4294901760, %v6768_v48 }
0x19d2   :  { %9058 = vmatmul.mubr.f32.vlgmr.msra.gmra.mrb[12].mxu1 %v6769_v52  ;;  %v8201_v52 = vld [vmem:[#allocation3] ss:$0 sm:$0xff] }
0x19d3   :  { %9418 = vmatpush3.bf16.msra.mxu1 %v10011_v53  ;;  %9064 = vmatprep.mubr.msk.f32.mxu1 %vm9786_vm1, %v9787_v25 }
0x19d4   :  { %9419 = vmatprep.subr.bf16.mxu1 %v9785_v23 }
0x19da   :  { %9065 = vmatmul.mubr.f32.vlgmr.msra.gmra.mrb[12].mxu1 %v6765_v19 }
0x19db   :  { %9421 = vmatpush3.bf16.msra.mxu1 %v10013_v54  ;;  %9071 = vmatprep.mubr.msk.f32.mxu1 %vm9786_vm1, %v9787_v25 }
0x19dc   :  { %9422 = vmatprep.subr.bf16.mxu1 %v9785_v23 }
0x19e2   :  { %9072 = vmatmul.mubr.f32.vlgmr.msra.gmra.mrb[12].mxu1 %v6766_v47  ;;  %v9803_v47 = vmov 40  }
0x19e3   :  { %9424 = vmatpush3.bf16.msra.mxu1 %v10006_v41  ;;  %9078 = vmatprep.mubr.msk.f32.mxu1 %vm9786_vm1, %v9787_v25 }
0x19e4   :  { %9425 = vmatprep.subr.bf16.mxu1 %v9785_v23  ;;  %9647 = vset.pattern.permute.xlu0 %v9803_v47 }
0x19e5   :  { %9646 = vset.pattern.permute.xlu1 %v9803_v47 }
0x19ea   :  { %9079 = vmatmul.mubr.f32.vlgmr.msra.gmra.mrb[12].mxu1 %v6767_v18  ;;  %v1085_v18 = vmul.f32 %v10252_v15, %v8198_v13 }
0x19eb   :  { %9427 = vmatpush3.bf16.msra.mxu1 %v10015_v55  ;;  %9085 = vmatprep.mubr.msk.f32.mxu1 %vm9786_vm1, %v9787_v25 }
0x19ec   :  { %9428 = vmatprep.subr.bf16.mxu1 %v9785_v23 }
0x19f2   :  { %9086 = vmatmul.mubr.f32.vlgmr.msra.gmra.mrb[12].mxu1 %v6765_v19 }
0x19f3   :  { %9430 = vmatpush3.bf16.msra.mxu1 %v10006_v41  ;;  %9092 = vmatprep.mubr.msk.f32.mxu1 %vm9786_vm1, %v9787_v25 }
0x19f4   :  { %9434 = vmatprep.subr.bf16.mxu1 %v9785_v23 }
0x19fa   :  { %9093 = vmatmul.mubr.f32.vlgmr.msra.gmra.mrb[12].mxu1 %v6765_v19 }
0x19fb   :  { %9436 = vmatpush3.bf16.msra.mxu1 %v9908_v36  ;;  %9106 = vmatprep.mubr.msk.f32.mxu1 %vm9786_vm1, %v9787_v25 }
0x19fc   :  { %9440 = vmatprep.subr.bf16.mxu1 %v9785_v23 }
0x1a37   :  { %v7215_v56 = vpop.permute.xlu0 %7214 }
0x1a38   :  { %v7216_v58 = vsel %vm124_vm2, %v7215_v56, 0 }
0x1a39   :  { %v7285_v5 = vand.u32 4294901760, %v7216_v58 }
0x1a3b   :  { %v7286_v27 = vsub.f32 %v7216_v58, %v7285_v5  ;;  %9107 = vmatmul.mubr.f32.vlgmr.msra.gmra.mrb[14].mxu1 %v7285_v5 }
0x1a3c   :  { %9442 = vmatpush3.bf16.msra.mxu1 %v9898_v24  ;;  %9120 = vmatprep.mubr.msk.f32.mxu1 %vm9786_vm1, %v9787_v25 }
0x1a3d   :  { %v7287_v59 = vand.u32 4294901760, %v7286_v27  ;;  %9446 = vmatprep.subr.bf16.mxu1 %v9785_v23 }
0x1a3f   :  { %v7288_v36 = vsub.f32 %v7286_v27, %v7287_v59  ;;  %9121 = vmatmul.mubr.f32.vlgmr.msra.gmra.mrb[16].mxu1 %v7287_v59 }
0x1a40   :  { %9448 = vmatpush3.bf16.msra.mxu1 %v9898_v24  ;;  %9134 = vmatprep.mubr.msk.f32.mxu1 %vm9786_vm1, %v9787_v25 }
0x1a41   :  { %v7289_v43 = vand.u32 4294901760, %v7288_v36  ;;  %9452 = vmatprep.subr.bf16.mxu1 %v9785_v23 }
0x1a43   :  { %9100 = vmatmul.mubr.f32.vlgmr.msra.gmra.mrb[14].mxu0 %v7289_v43  ;;  %9135 = vmatmul.mubr.f32.vlgmr.msra.gmra.mrb[18].mxu1 %v7285_v5 }
0x1a44   :  { %9439 = vmatpush3.bf16.msra.mxu0 %v9910_v37  ;;  %9113 = vmatprep.mubr.msk.f32.mxu0 %vm9786_vm1, %v9787_v25 }
0x1a45   :  { %9443 = vmatprep.subr.bf16.mxu0 %v9785_v23  ;;  %9454 = vmatpush3.bf16.msra.mxu1 %v10011_v53 }
0x1a46   :  { %9148 = vmatprep.mubr.msk.f32.mxu1 %vm9786_vm1, %v9787_v25  ;;  %9458 = vmatprep.subr.bf16.mxu1 %v9785_v23 }
0x1a47   :  { %9114 = vmatmul.mubr.f32.vlgmr.msra.gmra.mrb[16].mxu0 %v7286_v27 }
0x1a48   :  { %9445 = vmatpush3.bf16.msra.mxu0 %v9912_v38  ;;  %9127 = vmatprep.mubr.msk.f32.mxu0 %vm9786_vm1, %v9787_v25 }
0x1a49   :  { %9449 = vmatprep.subr.bf16.mxu0 %v9785_v23 }
0x1a4b   :  { %9128 = vmatmul.mubr.f32.vlgmr.msra.gmra.mrb[18].mxu0 %v7285_v5 }
0x1a4c   :  { %9451 = vmatpush3.bf16.msra.mxu0 %v10006_v41  ;;  %9141 = vmatprep.mubr.msk.f32.mxu0 %vm9786_vm1, %v9787_v25 }
0x1a4d   :  { %9455 = vmatprep.subr.bf16.mxu0 %v9785_v23 }
0x1acd   :  { %v10537_v24 = vpop.f32.mrb[12].mxu1 }
0x1ace   :  { %v9094_v37 = vpop.f32.mrb[13].mxu1 }
0x1b0e   :  { %v7372_v53 = vpop.f32.mrb[14].mxu1 }
0x1b0f   :  { %v9108_v62 = vpop.f32.mrb[15].mxu1 }
0x1b12   :  { %v7523_v63 = vpop.f32.mrb[16].mxu1 }
0x1b13   :  { %v9122_v38 = vpop.f32.mrb[17].mxu1 }
0x1b16   :  { %v7291_v6 = vpop.f32.mrb[14].mxu0  ;;  %v7673_v31 = vpop.f32.mrb[18].mxu1 }
0x1b17   :  { %v7373_v4 = vadd.f32 %v7372_v53, %v7291_v6  ;;  %v9101_v10 = vpop.f32.mrb[15].mxu0  ;;  %v9136_v57 = vpop.f32.mrb[19].mxu1 }
0x1b1a   :  { %v7448_v50 = vpop.f32.mrb[16].mxu0 }
0x1b1b   :  { %v7449_v11 = vadd.f32 %v7448_v50, %v7373_v4  ;;  %v9115_v12 = vpop.f32.mrb[17].mxu0  ;;  %v9781_v50 = vld [vmem:[%s10590_s0] sm:$0xff] }
0x1b1d   :  { %v7524_v60 = vadd.f32 %v7523_v63, %v7449_v11 }
0x1b1e   :  { %v7600_v16 = vpop.f32.mrb[18].mxu0 }
0x1b1f   :  { %v7601_v17 = vadd.f32 %v7600_v16, %v7524_v60  ;;  %v9129_v1 = vpop.f32.mrb[19].mxu0 }
0x1b21   :  { %v7674_v49 = vadd.f32 %v7673_v31, %v7601_v17 }
0x1b23   :  { %v7678_v22 = vadd.f32 %v7677_v20, %v7674_v49 }
0x1b25   :  { %v7679_v9 = vadd.f32 %v7678_v22, %v10537_v24 }
0x1b27   :  { %v7680_v26 = vadd.f32 %v10387_v46, %v7679_v9 }
0x1b29   :  { %9768 = vtanh.f32 %v7680_v26  ;;  %v8218_v28 = vmul.f32 -1.442695, %v7680_v26 }
0x1b2b   :  { %9770 = vpow2.f32 %v8218_v28 }
0x1b33   :  { %v9769_v39 = vpop.eup %9768 }
0x1b34   :  { %7690 = vrot.lane.b32.xlu1 %v9769_v39, %s9783_s15 }
0x1b35   :  { %v9771_v34 = vpop.eup %9770 }
0x1b36   :  { %v7684_v0 = vadd.f32 1.0, %v9771_v34 }
0x1b38   :  { %9772 = vrcp.f32 %v7684_v0 }
0x1b42   :  { %v9773_v42 = vpop.eup %9772 }
0x1b43   :  { %v7688_v46 = vmul.f32 %v9773_v42, %v10479_v29 }
0x1ba6   :  { %v7691_v51 = vpop.permute.xlu1 %7690 }
0x1ba7   :  { %v7693_v7 = vmul.f32 %v9773_v42, %v7691_v51 }
0x1ba9   :  { %7695 = vrot.lane.b32.xlu0 %v7693_v7, %s9784_s16 }
0x1c1b   :  { %v7696_v2 = vpop.permute.xlu0 %7695 }
0x1c1c   :  { %v7698_v3 = vadd.f32 %v7696_v2, %v7688_v46 }
0x1c1e   :  { %9774 = vtanh.f32 %v7698_v3 }
0x1c28   :  { %v9775_v40 = vpop.eup %9774 }
0x1c29   :  { %7701 = vrot.lane.b32.xlu1 %v9775_v40, %s9784_s16  ;;  %s9801_s16 = smov 2  }
0x1c2d   :  { %2097 = vrot.lane.b32.xlu1 %v8198_v13, %s9797_s3 }
0x1c31   :  { %4121 = vrot.lane.b32.xlu1 %v8198_v13, %s9798_s19 }
0x1c35   :  { %6145 = vrot.lane.b32.xlu1 %v8198_v13, %s9799_s20 }
0x1c39   :  { %8169 = vrot.lane.b32.xlu1 %v8198_v13, %s9800_s21 }
0x1c9b   :  { %v7702_v29 = vpop.permute.xlu1 %7701 }
0x1c9c   :  { %v7704_v44 = vmul.f32 %v9773_v42, %v7702_v29 }
0x1c9e   :  { %7706 = vrot.lane.b32.xlu0 %v7704_v44, %s9788_s4  ;;  %s9807_s4 = smov 37  }
0x1c9f   :  { %v2098_v61 = vpop.permute.xlu1 %2097 }
0x1ca0   :  { %v2100_v19 = vmul.f32 %v10252_v15, %v2098_v61 }
0x1ca2   :  { %3109 = vrot.lane.b32.xlu0 %v8198_v13, %s9801_s16  ;;  %2102 = vrot.lane.b32.xlu1 %v2100_v19, %s9802_s8 }
0x1ca3   :  { %v4122_v48 = vpop.permute.xlu1 %4121 }
0x1ca4   :  { %v4124_v56 = vmul.f32 %v10252_v15, %v4122_v48  ;;  %v81_v48 = vlaneseq }
0x1ca6   :  { %5133 = vrot.lane.b32.xlu0 %v8198_v13, %s9804_s22 }
0x1ca7   :  { %v6146_v58 = vpop.permute.xlu1 %6145 }
0x1ca8   :  { %v6148_v5 = vmul.f32 %v10252_v15, %v6146_v58 }
0x1caa   :  { %7157 = vrot.lane.b32.xlu0 %v8198_v13, %s9805_s23 }
0x1cab   :  { %v8170_v27 = vpop.permute.xlu1 %8169 }
0x1cac   :  { %v8172_v59 = vmul.f32 %v10252_v15, %v8170_v27 }
0x1cae   :  { %1087 = vrot.lane.b32.xlu0 %v1085_v18, %s9806_s24 }
0x1cb2   :  { %1091 = vrot.lane.b32.xlu0 %v8201_v52, %s9806_s24  ;;  %v82_v52 = vshrl.u32 %v81_v48, 7 }
0x1cb4   :  { %v2114_v27 = vsub.s32 1, %v82_v52 }
0x1cb6   :  { %4126 = vrot.lane.b32.xlu0 %v4124_v56, %s9807_s4  ;;  %v84_v56 = vand.u32 127, %v81_v48 }
0x1cb8   :  { %vm85_vm3 = vcmp.eq.s32.totalorder %v82_v52, %v84_v56 }
0x1cba   :  { %6150 = vrot.lane.b32.xlu0 %v6148_v5, %s9808_s25  ;;  %v1102_v5 = vsub.s32 0, %v82_v52 }
0x1cbe   :  { %8174 = vrot.lane.b32.xlu0 %v8172_v59, %s9809_s26  ;;  %v8202_v59 = vsel %vm85_vm3, 1.0, %v9787_v25 }
0x1d10   :  { %v7707_v36 = vpop.permute.xlu0 %7706 }
0x1d11   :  { %v7708_v43 = vsel %vm124_vm2, %v7707_v36, 0  ;;  %v3126_v36 = vsub.s32 2, %v82_v52 }
0x1d12   :  { %v7777_v37 = vand.u32 4294901760, %v7708_v43 }
0x1d14   :  { %v7778_v53 = vsub.f32 %v7708_v43, %v7777_v37  ;;  %9149 = vmatmul.mubr.f32.vlgmr.msra.gmra.mrb[20].mxu1 %v7777_v37  ;;  %v3110_v62 = vpop.permute.xlu0 %3109 }
0x1d15   :  { %v3112_v63 = vmul.f32 %v10252_v15, %v3110_v62  ;;  %9460 = vmatpush3.bf16.msra.mxu1 %v10006_v41  ;;  %9162 = vmatprep.mubr.msk.f32.mxu1 %vm9786_vm1, %v9787_v25  ;;  %v4138_v62 = vsub.s32 3, %v82_v52 }
0x1d16   :  { %v7779_v38 = vand.u32 4294901760, %v7778_v53  ;;  %9464 = vmatprep.subr.bf16.mxu1 %v9785_v23 }
0x1d17   :  { %3114 = vrot.lane.b32.xlu1 %v3112_v63, %s9810_s27 }
0x1d18   :  { %v7780_v6 = vsub.f32 %v7778_v53, %v7779_v38  ;;  %9163 = vmatmul.mubr.f32.vlgmr.msra.gmra.mrb[22].mxu1 %v7779_v38  ;;  %v5134_v31 = vpop.permute.xlu0 %5133  ;;  %v3127_v38 = vrot.slane %v8202_v59, %v3126_v36 }
0x1d19   :  { %v5136_v4 = vmul.f32 %v10252_v15, %v5134_v31  ;;  %9466 = vmatpush3.bf16.msra.mxu1 %v10006_v41  ;;  %9176 = vmatprep.mubr.msk.f32.mxu1 %vm9786_vm1, %v9787_v25  ;;  %v2103_v41 = vpop.permute.xlu1 %2102 }
0x1d1a   :  { %v7781_v10 = vand.u32 4294901760, %v7780_v6 }
0x1d1b   :  { %5138 = vrot.lane.b32.xlu1 %v5136_v4, %s9811_s28  ;;  %v4139_v4 = vrot.slane %v8202_v59, %v4138_v62 }
0x1d1c   :  { %9142 = vmatmul.mubr.f32.vlgmr.msra.gmra.mrb[20].mxu0 %v7781_v10  ;;  %9177 = vmatmul.mubr.f32.vlgmr.msra.gmra.mrb[24].mxu1 %v7777_v37  ;;  %v7158_v57 = vpop.permute.xlu0 %7157 }
0x1d1d   :  { %9457 = vmatpush3.bf16.msra.mxu0 %v10013_v54  ;;  %v7160_v11 = vmul.f32 %v9781_v50, %v7158_v57  ;;  %9155 = vmatprep.mubr.msk.f32.mxu0 %vm9786_vm1, %v9787_v25  ;;  %v2105_v54 = vadd.f32 %v2103_v41, %v10131_v32  ;;  %v5150_v50 = vsub.s32 4, %v82_v52 }
0x1d1e   :  { %9461 = vmatprep.subr.bf16.mxu0 %v9785_v23 }
0x1d1f   :  { %7162 = vrot.lane.b32.xlu1 %v7160_v11, %s9812_s30 }
0x1d20   :  { %9156 = vmatmul.mubr.f32.vlgmr.msra.gmra.mrb[22].mxu0 %v7778_v53  ;;  %v1088_v15 = vpop.permute.xlu0 %1087  ;;  %v2115_v53 = vrot.slane %v8202_v59, %v2114_v27 }
0x1d21   :  { %9463 = vmatpush3.bf16.msra.mxu0 %v10015_v55  ;;  %9169 = vmatprep.mubr.msk.f32.mxu0 %vm9786_vm1, %v9787_v25  ;;  %v1090_v12 = vadd.f32 %v1088_v15, %v10052_v21  ;;  %v6162_v15 = vsub.s32 5, %v82_v52 }
0x1d24   :  { %9170 = vmatmul.mubr.f32.vlgmr.msra.gmra.mrb[24].mxu0 %v7777_v37  ;;  %v1092_v60 = vpop.permute.xlu0 %1091  ;;  %v1103_v37 = vrot.slane %v8202_v59, %v1102_v5 }
0x1d25   :  { %v1094_v16 = vadd.f32 %v1092_v60, %v1090_v12  ;;  %v2106_v17 = vadd.f32 %v2105_v54, %v1092_v60  ;;  %v5151_v12 = vrot.slane %v8202_v59, %v5150_v50 }
0x1d27   :  { %1097 = vperm.xlu1 %9646, %v1094_v16   ;;  %2109 = vperm.xlu0 %9647, %v2106_v17   ;;  %v6163_v16 = vrot.slane %v8202_v59, %v6162_v15 }
0x1d28   :  { %v4127_v23 = vpop.permute.xlu0 %4126 }
0x1d29   :  { %v4129_v49 = vadd.f32 %v4127_v23, %v10302_v8 }
0x1d2b   :  { %v4130_v32 = vadd.f32 %v4129_v49, %v1092_v60 }
0x1d2c   :  { %v6151_v22 = vpop.permute.xlu0 %6150 }
0x1d2d   :  { %v6153_v21 = vadd.f32 %v6151_v22, %v10462_v30 }
0x1d2f   :  { %v6154_v0 = vadd.f32 %v6153_v21, %v1092_v60 }
0x1d30   :  { %v8175_v19 = vpop.permute.xlu0 %8174 }
0x1d89   :  { %v3115_v1 = vpop.permute.xlu1 %3114 }
0x1d8a   :  { %v3117_v20 = vadd.f32 %v3115_v1, %v10209_v33  ;;  %v7174_v1 = vsub.s32 6, %v82_v52 }
0x1d8c   :  { %v3118_v55 = vadd.f32 %v3117_v20, %v1092_v60  ;;  %v7175_v22 = vrot.slane %v8202_v59, %v7174_v1 }
0x1d8d   :  { %v5139_v9 = vpop.permute.xlu1 %5138 }
0x1d8e   :  { %v5141_v26 = vadd.f32 %v5139_v9, %v10381_v45  ;;  %3121 = vperm.xlu1 %9646, %v3118_v55   ;;  %v8186_v55 = vsub.s32 7, %v82_v52 }
0x1d90   :  { %v5142_v39 = vadd.f32 %v5141_v26, %v1092_v60 }
0x1d91   :  { %v7163_v28 = vpop.permute.xlu1 %7162 }
0x1d92   :  { %v7165_v34 = vadd.f32 %v7163_v28, %v10537_v24  ;;  %5145 = vperm.xlu0 %9647, %v5142_v39   ;;  %4133 = vperm.xlu1 %9646, %v4130_v32   ;;  %v8187_v32 = vrot.slane %v8202_v59, %v8186_v55 }
0x1d94   :  { %v7166_v35 = vadd.f32 %v7165_v34, %v1092_v60 }
0x1d96   :  { %7169 = vperm.xlu0 %9647, %v7166_v35   ;;  %6157 = vperm.xlu1 %9646, %v6154_v0  }
0x1da6   :  { %v1098_v58 = vpop.permute.xlu1 %1097  ;;  %v2110_v63 = vpop.permute.xlu0 %2109 }
0x1da7   :  { %v1104_v6 = vmul.f32 %v1103_v37, %v1098_v58  ;;  %v2116_v31 = vmul.f32 %v2115_v53, %v2110_v63 }
0x1da9   :  { %v2117_v11 = vadd.f32 %v2116_v31, %v1104_v6 }
0x1de7   :  { %v7864_v33 = vpop.f32.mrb[20].mxu1 }
0x1de8   :  { %v9150_v8 = vpop.f32.mrb[21].mxu1 }
0x1deb   :  { %v8015_v42 = vpop.f32.mrb[22].mxu1 }
0x1dec   :  { %v9164_v51 = vpop.f32.mrb[23].mxu1 }
0x1def   :  { %v7783_v7 = vpop.f32.mrb[20].mxu0  ;;  %v8165_v45 = vpop.f32.mrb[24].mxu1 }
0x1df0   :  { %v7865_v46 = vadd.f32 %v7864_v33, %v7783_v7  ;;  %v9143_v2 = vpop.f32.mrb[21].mxu0  ;;  %v9178_v3 = vpop.f32.mrb[25].mxu1 }
0x1df3   :  { %v7940_v30 = vpop.f32.mrb[22].mxu0 }
0x1df4   :  { %v7941_v40 = vadd.f32 %v7940_v30, %v7865_v46  ;;  %v9157_v14 = vpop.f32.mrb[23].mxu0 }
0x1df6   :  { %v8016_v13 = vadd.f32 %v8015_v42, %v7941_v40 }
0x1df7   :  { %v8092_v24 = vpop.f32.mrb[24].mxu0 }
0x1df8   :  { %v8093_v29 = vadd.f32 %v8092_v24, %v8016_v13  ;;  %v9171_v44 = vpop.f32.mrb[25].mxu0 }
0x1dfa   :  { %v8166_v61 = vadd.f32 %v8165_v45, %v8093_v29 }
0x1dfc   :  { %v8177_v47 = vadd.f32 %v8175_v19, %v8166_v61 }
0x1dfe   :  { %v8178_v18 = vadd.f32 %v8177_v47, %v1092_v60 }
0x1e00   :  { %8181 = vperm.xlu1 %9646, %v8178_v18  }
0x1e0d   :  { %v3122_v43 = vpop.permute.xlu1 %3121 }
0x1e0e   :  { %v3128_v57 = vmul.f32 %v3127_v38, %v3122_v43 }
0x1e10   :  { %v3129_v54 = vadd.f32 %v3128_v57, %v2117_v11 }
0x1e11   :  { %v4134_v10 = vpop.permute.xlu1 %4133  ;;  %v5146_v60 = vpop.permute.xlu0 %5145 }
0x1e12   :  { %v4140_v41 = vmul.f32 %v4139_v4, %v4134_v10  ;;  %v5152_v23 = vmul.f32 %v5151_v12, %v5146_v60 }
0x1e14   :  { %v4141_v25 = vadd.f32 %v4140_v41, %v3129_v54 }
0x1e15   :  { %v6158_v17 = vpop.permute.xlu1 %6157  ;;  %v7170_v9 = vpop.permute.xlu0 %7169 }
0x1e16   :  { %v5153_v20 = vadd.f32 %v5152_v23, %v4141_v25  ;;  %v6164_v49 = vmul.f32 %v6163_v16, %v6158_v17  ;;  %v7176_v21 = vmul.f32 %v7175_v22, %v7170_v9 }
0x1e18   :  { %v6165_v26 = vadd.f32 %v6164_v49, %v5153_v20 }
0x1e1a   :  { %v7177_v28 = vadd.f32 %v7176_v21, %v6165_v26 }
0x1e7f   :  { %v8182_v39 = vpop.permute.xlu1 %8181 }
0x1e80   :  { %v8188_v34 = vmul.f32 %v8187_v32, %v8182_v39 }
0x1e82   :  { %v8189_v0 = vadd.f32 %v8188_v34, %v7177_v28 }
0x1e84   :  { %8191 = vst.msk [vmem:[%s10599_s9] sm:$0xff] %vm8190_vm4, %v8189_v0 }

</bundles_post_ra>
